<compile_context>
chip_gen: v7x
topology: tpu7x:2x2x1
jax: 0.10.0
libtpu: 0.0.40
codegen_flags: <defaults>
</compile_context>

<pallas_src>
import jax
import jax.numpy as jnp
from jax.experimental import pallas as pl
from jax.experimental.pallas import tpu as pltpu

EPS = 1e-12  # matches LayerNorm((256,), eps=1e-12) in the PyTorch module


def add_layernorm_kernel(x_ref, y_ref, gamma_ref, beta_ref, o_ref):
    # x_ref, y_ref, o_ref: (TR, H)   gamma_ref, beta_ref: (1, H)
    s = (x_ref[...] + y_ref[...]).astype(jnp.float32)        # add (VPU)
    inv_h = jnp.float32(1.0 / s.shape[-1])

    # One-pass moments: two independent lane reductions (overlap on XLU),
    # then scale by constant 1/H (no divides).
    row_sum = jnp.sum(s, axis=-1, keepdims=True)
    row_sumsq = jnp.sum(s * s, axis=-1, keepdims=True)
    mean = row_sum * inv_h
    # Clamp: catastrophic cancellation can make E[x^2]-mean^2 slightly
    # negative; with eps=1e-12 that would NaN through rsqrt.
    var = jnp.maximum(row_sumsq * inv_h - mean * mean, jnp.float32(0.0))

    inv = jax.lax.rsqrt(var + jnp.float32(EPS))               # EUP
    a = inv * gamma_ref[...].astype(jnp.float32)              # fold gamma once
    out = (s - mean) * a + beta_ref[...].astype(jnp.float32)
    o_ref[...] = out.astype(o_ref.dtype)


def _num_tensorcores_per_device() -> int:
    """Best-effort TC-per-chip query: 2 on v7x, 1 on v5e/v6e; safe fallback 1."""
    try:
        info = pltpu.get_tpu_info()
        for attr in ("num_cores", "tensorcores_per_chip", "num_tensorcores",
                     "cores_per_chip"):
            n = getattr(info, attr, None)
            if isinstance(n, int) and n > 0:
                return n
    except Exception:
        pass
    try:
        kind = jax.devices()[0].device_kind.lower()
        if "v7" in kind:
            return 2
    except Exception:
        pass
    return 1


def add_layernorm(x231, x197, gamma, beta, *, tile_rows=None):
    B, S, H = x231.shape
    R = B * S

    if tile_rows is None:
        n_cores = _num_tensorcores_per_device()
        if n_cores >= 2 and R % 2 == 0 and (R // 2) % 8 == 0:
            # One (8,128)-aligned tile per TensorCore on 2-TC chips (v7x).
            tile_rows = R // 2
        else:
            # Single-TC chips (v5e/v6e): one grid step, no per-step overhead.
            tile_rows = R
    assert R % tile_rows == 0, "row count must be divisible by tile_rows"
    assert tile_rows % 8 == 0 and H % 128 == 0, "block must be (8,128)-aligned"

    x2d = x231.reshape(R, H)
    y2d = x197.reshape(R, H)
    g2d = gamma.reshape(1, H)
    b2d = beta.reshape(1, H)

    out = pl.pallas_call(
        add_layernorm_kernel,
        out_shape=jax.ShapeDtypeStruct((R, H), x231.dtype),
        grid_spec=pltpu.PrefetchScalarGridSpec(
            num_scalar_prefetch=0,
            grid=(R // tile_rows,),
            in_specs=[
                pl.BlockSpec((tile_rows, H), lambda i: (i, 0)),
                pl.BlockSpec((tile_rows, H), lambda i: (i, 0)),
                # constant index_map -> gamma/beta stay resident across steps
                pl.BlockSpec((1, H), lambda i: (0, 0)),
                pl.BlockSpec((1, H), lambda i: (0, 0)),
            ],
            out_specs=pl.BlockSpec((tile_rows, H), lambda i: (i, 0)),
        ),
        compiler_params=pltpu.CompilerParams(
            dimension_semantics=("parallel",),
        ),
    )(x2d, y2d, g2d, b2d)
    return out.reshape(B, S, H)


if __name__ == "__main__":
    key = jax.random.PRNGKey(0)
    k1, k2 = jax.random.split(key)

    B, S, H = 1, 384, 256
    x231 = jax.random.normal(k1, (B, S, H), dtype=jnp.float32)
    x197 = jax.random.normal(k2, (B, S, H), dtype=jnp.float32)

    # LayerNorm((256,), elementwise_affine=True) default init: gamma=1, beta=0
    gamma = jnp.ones((H,), dtype=jnp.float32)
    beta = jnp.zeros((H,), dtype=jnp.float32)

    out = add_layernorm(x231, x197, gamma, beta)
    jax.block_until_ready(out)

    # reference check in plain JAX (centered / two-pass formulation, as torch)
    s = x231 + x197
    mean = jnp.mean(s, axis=-1, keepdims=True)
    var = jnp.mean((s - mean) ** 2, axis=-1, keepdims=True)
    ref = (s - mean) / jnp.sqrt(var + EPS) * gamma + beta
    assert jnp.allclose(out, ref, atol=1e-4, rtol=1e-4), "mismatch vs reference"

    print("KERNEL_OK")
</pallas_src>

<mosaic_0001>
module attributes {stable_mosaic.version = 11 : i64} {
  func.func @add_layernorm_kernel(%arg0: i32, %arg1: memref<384x256xf32, #tpu.memory_space<vmem>>, %arg2: memref<384x256xf32, #tpu.memory_space<vmem>>, %arg3: memref<1x256xf32, #tpu.memory_space<vmem>>, %arg4: memref<1x256xf32, #tpu.memory_space<vmem>>, %arg5: memref<384x256xf32, #tpu.memory_space<vmem>>) attributes {dimension_semantics = [#tpu.dimension_semantics<parallel>], iteration_bounds = array<i64: 1>, scalar_prefetch = 0 : i64, scratch_operands = 0 : i64, tpu.core_type = #tpu.core_type<tc>, window_params = [{transform_indices = @transform_0, window_bounds = array<i64: 384, 256>}, {transform_indices = @transform_1, window_bounds = array<i64: 384, 256>}, {pipeline_mode = #tpu.pipeline_mode<synchronous>, transform_indices = @transform_2, window_bounds = array<i64: 1, 256>}, {pipeline_mode = #tpu.pipeline_mode<synchronous>, transform_indices = @transform_3, window_bounds = array<i64: 1, 256>}, {transform_indices = @transform_4, window_bounds = array<i64: 384, 256>}]} {
    %c0 = arith.constant 0 : index
    %c0_0 = arith.constant 0 : index
    %0 = vector.load %arg1[%c0, %c0_0] : memref<384x256xf32, #tpu.memory_space<vmem>>, vector<384x256xf32>
    %c0_1 = arith.constant 0 : index
    %c0_2 = arith.constant 0 : index
    %1 = vector.load %arg2[%c0_1, %c0_2] : memref<384x256xf32, #tpu.memory_space<vmem>>, vector<384x256xf32>
    %2 = arith.addf %0, %1 : vector<384x256xf32>
    %cst = arith.constant dense<0.000000e+00> : vector<384xf32>
    %3 = vector.multi_reduction <add>, %2, %cst [1] : vector<384x256xf32> to vector<384xf32>
    %4 = vector.shape_cast %3 : vector<384xf32> to vector<384x1xf32>
    %5 = arith.mulf %2, %2 : vector<384x256xf32>
    %cst_3 = arith.constant dense<0.000000e+00> : vector<384xf32>
    %6 = vector.multi_reduction <add>, %5, %cst_3 [1] : vector<384x256xf32> to vector<384xf32>
    %7 = vector.shape_cast %6 : vector<384xf32> to vector<384x1xf32>
    %cst_4 = arith.constant 3.906250e-03 : f32
    %8 = vector.broadcast %cst_4 : f32 to vector<384x1xf32>
    %9 = arith.mulf %4, %8 : vector<384x1xf32>
    %cst_5 = arith.constant 3.906250e-03 : f32
    %10 = vector.broadcast %cst_5 : f32 to vector<384x1xf32>
    %11 = arith.mulf %7, %10 : vector<384x1xf32>
    %12 = arith.mulf %9, %9 : vector<384x1xf32>
    %13 = arith.subf %11, %12 : vector<384x1xf32>
    %cst_6 = arith.constant 0.000000e+00 : f32
    %14 = vector.broadcast %cst_6 : f32 to vector<384x1xf32>
    %15 = arith.maximumf %13, %14 : vector<384x1xf32>
    %cst_7 = arith.constant 9.99999996E-13 : f32
    %16 = vector.broadcast %cst_7 : f32 to vector<384x1xf32>
    %17 = arith.addf %15, %16 : vector<384x1xf32>
    %18 = math.rsqrt %17 : vector<384x1xf32>
    %c0_8 = arith.constant 0 : index
    %c0_9 = arith.constant 0 : index
    %19 = vector.load %arg3[%c0_8, %c0_9] : memref<1x256xf32, #tpu.memory_space<vmem>>, vector<1x256xf32>
    %20 = vector.broadcast %18 : vector<384x1xf32> to vector<384x256xf32>
    %21 = vector.broadcast %19 : vector<1x256xf32> to vector<384x256xf32>
    %22 = arith.mulf %20, %21 : vector<384x256xf32>
    %23 = vector.broadcast %9 : vector<384x1xf32> to vector<384x256xf32>
    %24 = arith.subf %2, %23 : vector<384x256xf32>
    %25 = arith.mulf %24, %22 : vector<384x256xf32>
    %c0_10 = arith.constant 0 : index
    %c0_11 = arith.constant 0 : index
    %26 = vector.load %arg4[%c0_10, %c0_11] : memref<1x256xf32, #tpu.memory_space<vmem>>, vector<1x256xf32>
    %27 = vector.broadcast %26 : vector<1x256xf32> to vector<384x256xf32>
    %28 = arith.addf %25, %27 : vector<384x256xf32>
    %c0_12 = arith.constant 0 : index
    %c0_13 = arith.constant 0 : index
    %29 = vector.load %arg5[%c0_12, %c0_13] : memref<384x256xf32, #tpu.memory_space<vmem>>, vector<384x256xf32>
    tpu.vector_store %arg5[%c0_12, %c0_13], %28 {strides = array<i32>} : memref<384x256xf32, #tpu.memory_space<vmem>>, vector<384x256xf32>,
    return
  }
  func.func @transform_0(%arg0: i32) -> (i32, i32) {
    %c0_i32 = arith.constant 0 : i32
    %c0_i32_0 = arith.constant 0 : i32
    return %arg0, %c0_i32 : i32, i32
  }
  func.func @transform_1(%arg0: i32) -> (i32, i32) {
    %c0_i32 = arith.constant 0 : i32
    %c0_i32_0 = arith.constant 0 : i32
    return %arg0, %c0_i32 : i32, i32
  }
  func.func @transform_2(%arg0: i32) -> (i32, i32) {
    %c0_i32 = arith.constant 0 : i32
    %c0_i32_0 = arith.constant 0 : i32
    %c0_i32_1 = arith.constant 0 : i32
    return %c0_i32, %c0_i32_0 : i32, i32
  }
  func.func @transform_3(%arg0: i32) -> (i32, i32) {
    %c0_i32 = arith.constant 0 : i32
    %c0_i32_0 = arith.constant 0 : i32
    %c0_i32_1 = arith.constant 0 : i32
    return %c0_i32, %c0_i32_0 : i32, i32
  }
  func.func @transform_4(%arg0: i32) -> (i32, i32) {
    %c0_i32 = arith.constant 0 : i32
    %c0_i32_0 = arith.constant 0 : i32
    return %arg0, %c0_i32 : i32, i32
  }
}

</mosaic_0001>

<bundles_post_ra>
// kernel: tpu_custom_call.1
= control target key start
LH: loop header
LB: loop body
LE: loop exit
PB: predicated region body
PF: predicated region fallthrough
CT: control target
= control target key end

     0   :  { %9 = vsyncpa [#allocation3], 0  ;;  %s3488_s0 = inlined_call_operand.hbm [shape: f32[384,256], index: 0, kind: input, shape index: {}]   ;;  %s3489_s1 = inlined_call_operand.hbm [shape: f32[384,256], index: 1, kind: input, shape index: {}]   ;;  %s3490_s2 = inlined_call_operand.vmem [shape: f32[1,256], index: 2, kind: input, shape index: {}]   ;;  %s3491_s3 = inlined_call_operand.vmem [shape: f32[1,256], index: 3, kind: input, shape index: {}]   ;;  %s3492_s4 = inlined_call_operand.hbm [shape: f32[384,256], index: 4, kind: output, shape index: {}]  }
   0x1   :  { %10 = vsyncpa [#allocation6], 0 }
   0x2   :  { %11 = vsyncpa [#allocation4], 0  ;;  %s1749_s15 = smov [#allocation2]   ;;  %s1677_s19 = scalar_lea.hbm %s3488_s0, 12288 }
   0x3   :  { %s17_s16 = sshll.u32 %s1749_s15, 4  ;;  %p1678_p0 = scmp.ne.s32.totalorder %s3488_s0, %s1677_s19  ;;  %s18_s16 = int_to_ptr.vmem [resolvable:$true] %s17_s16 }
   0x4   :  { %p1681_p1 = scmp.lt.u32.totalorder %s1677_s19, %s3488_s0 }
   0x6   :  { %p1683_p2 = pnand %p1681_p1, %p1678_p0 }
   0x8   :  { %1686 = shalt.err (!%p1683_p2)
}
   0x9   :  { %s1687_s24 = scalar_lea.vmem %s18_s16, 12288  ;;  %p1692_p4 = scmp.lt.s32.totalorder %s18_s16, %s18_s16 }
   0xa   :  { %p1688_p3 = scmp.ne.s32.totalorder %s18_s16, %s1687_s24  ;;  %p1693_p5 = scmp.lt.s32.totalorder %s1687_s24, %s1687_s24 }
   0xc   :  { %p1694_p6 = por %p1693_p5, %p1692_p4 }
   0xe   :  { %p1695_p7 = pnand %p1694_p6, %p1688_p3 }
  0x10   :  { %1698 = shalt.err (!%p1695_p7)
}
  0x11   :  { %s1750_s25 = smov 256   ;;  %s1751_s26 = smov 16  }
  0x12   :  { %23 = dma.hbm_to_vmem [thread:$0]  %s3488_s0, 12288, %s18_s16, [#allocation3], %s1750_s25, %s1750_s25, %s1751_s26  }
  0x13   :  { %s1752_s29 = smov [#allocation5]   ;;  %s1699_s7 = scalar_lea.hbm %s3489_s1, 12288 }
  0x14   :  { %s29_s30 = sshll.u32 %s1752_s29, 4  ;;  %p1700_p8 = scmp.ne.s32.totalorder %s3489_s1, %s1699_s7  ;;  %s30_s30 = int_to_ptr.vmem [resolvable:$true] %s29_s30 }
  0x15   :  { %p1703_p9 = scmp.lt.u32.totalorder %s1699_s7, %s3489_s1 }
  0x17   :  { %p1705_p10 = pnand %p1703_p9, %p1700_p8 }
  0x19   :  { %1708 = shalt.err (!%p1705_p10)
}
  0x1a   :  { %s1709_s12 = scalar_lea.vmem %s30_s30, 12288  ;;  %p1714_p12 = scmp.lt.s32.totalorder %s30_s30, %s30_s30 }
  0x1b   :  { %p1710_p11 = scmp.ne.s32.totalorder %s30_s30, %s1709_s12  ;;  %p1715_p13 = scmp.lt.s32.totalorder %s1709_s12, %s1709_s12 }
  0x1d   :  { %p1716_p0 = por %p1715_p13, %p1714_p12 }
  0x1f   :  { %p1717_p1 = pnand %p1716_p0, %p1710_p11 }
  0x21   :  { %1720 = shalt.err (!%p1717_p1)
}
  0x22   :  { %35 = dma.hbm_to_vmem [thread:$0]  %s3489_s1, 12288, %s30_s30, [#allocation6], %s1750_s25, %s1750_s25, %s1751_s26  }
  0x23   :  { %1743 = dma.done.wait [#allocation3], 12288  }
  0x24   :  { %1744 = vsyncadd [#allocation3], 4294955008 }
  0x25   :  { %1745 = dma.done.wait [#allocation6], 12288  }
  0x26   :  { %1746 = vsyncadd [#allocation6], 4294955008  ;;  %v50_v0 = vld [vmem:[#allocation2 + $0x20] sm:$0xff]  ;;  %v51_v1 = vld [vmem:[#allocation2 + $0x28] sm:$0xff] }
  0x27   :  { %v146_v2 = vld [vmem:[#allocation5 + $0x20] sm:$0xff]  ;;  %v147_v3 = vld [vmem:[#allocation5 + $0x28] sm:$0xff]  ;;  %v52_v10 = vld [vmem:[#allocation2 + $0x30] sm:$0xff] }
  0x28   :  { %v1809_v4 = vadd.f32 %v146_v2, %v50_v0  ;;  %v46_v5 = vld [vmem:[#allocation2] sm:$0xff]  ;;  %v47_v6 = vld [vmem:[#allocation2 + $0x8] sm:$0xff]  ;;  %v1811_v7 = vadd.f32 %v147_v3, %v51_v1  ;;  %v53_v13 = vld [vmem:[#allocation2 + $0x38] sm:$0xff] }
  0x29   :  { %v142_v8 = vld [vmem:[#allocation5] sm:$0xff]  ;;  %v143_v9 = vld [vmem:[#allocation5 + $0x8] sm:$0xff]  ;;  %v148_v14 = vld [vmem:[#allocation5 + $0x30] sm:$0xff] }
  0x2a   :  { %3737 = vst [vmem:[#allocation11_spill] sm:$0xff] %v1809_v4  ;;  %3738 = vst [vmem:[#allocation12_spill] sm:$0xff] %v1811_v7  ;;  %v1813_v11 = vadd.f32 %v142_v8, %v46_v5  ;;  %v1815_v12 = vadd.f32 %v143_v9, %v47_v6  ;;  %v149_v15 = vld [vmem:[#allocation5 + $0x38] sm:$0xff]  ;;  %v340_v16 = vadd.f32 %v1811_v7, %v1809_v4  ;;  %v48_v19 = vld [vmem:[#allocation2 + $0x10] sm:$0xff] }
  0x2b   :  { %v1819_v17 = vadd.f32 %v148_v14, %v52_v10  ;;  %v1821_v18 = vadd.f32 %v149_v15, %v53_v13  ;;  %v49_v20 = vld [vmem:[#allocation2 + $0x18] sm:$0xff]  ;;  %v144_v21 = vld [vmem:[#allocation5 + $0x10] sm:$0xff]  ;;  %v54_v31 = vld [vmem:[#allocation2 + $0x40] sm:$0xff] }
  0x2c   :  { %v334_v22 = vadd.f32 %v1815_v12, %v1813_v11  ;;  %v145_v23 = vld [vmem:[#allocation5 + $0x18] sm:$0xff]  ;;  %v1825_v24 = vadd.f32 %v144_v21, %v48_v19  ;;  %v56_v25 = vld [vmem:[#allocation2 + $0x50] sm:$0xff]  ;;  %341 = vadd.xlane.f32.xlu1 %v340_v16  ;;  %v55_v34 = vld [vmem:[#allocation2 + $0x48] sm:$0xff] }
  0x2d   :  { %v57_v26 = vld [vmem:[#allocation2 + $0x58] sm:$0xff]  ;;  %v343_v27 = vadd.f32 %v1821_v18, %v1819_v17  ;;  %v1829_v28 = vadd.f32 %v145_v23, %v49_v20  ;;  %v152_v29 = vld [vmem:[#allocation5 + $0x50] sm:$0xff]  ;;  %v150_v35 = vld [vmem:[#allocation5 + $0x40] sm:$0xff] }
  0x2e   :  { %v153_v30 = vld [vmem:[#allocation5 + $0x58] sm:$0xff]  ;;  %335 = vadd.xlane.f32.xlu0 %v334_v22  ;;  %v1831_v32 = vadd.f32 %v152_v29, %v56_v25  ;;  %v151_v36 = vld [vmem:[#allocation5 + $0x48] sm:$0xff]  ;;  %v1837_v38 = vadd.f32 %v150_v35, %v54_v31  ;;  %v60_v40 = vld [vmem:[#allocation2 + $0x70] sm:$0xff] }
  0x2f   :  { %v1833_v33 = vadd.f32 %v153_v30, %v57_v26  ;;  %v337_v37 = vadd.f32 %v1829_v28, %v1825_v24  ;;  %v1839_v39 = vadd.f32 %v151_v36, %v55_v34  ;;  %v61_v41 = vld [vmem:[#allocation2 + $0x78] sm:$0xff]  ;;  %v156_v42 = vld [vmem:[#allocation5 + $0x70] sm:$0xff]  ;;  %v58_v44 = vld [vmem:[#allocation2 + $0x60] sm:$0xff] }
  0x30   :  { %3739 = vst [vmem:[#allocation13_spill] sm:$0xff] %v1831_v32  ;;  %v157_v43 = vld [vmem:[#allocation5 + $0x78] sm:$0xff]  ;;  %v59_v45 = vld [vmem:[#allocation2 + $0x68] sm:$0xff]  ;;  %344 = vadd.xlane.f32.xlu1 %v343_v27  ;;  %v1843_v47 = vadd.f32 %v156_v42, %v60_v40  ;;  %v154_v49 = vld [vmem:[#allocation5 + $0x60] sm:$0xff] }
  0x31   :  { %3740 = vst [vmem:[#allocation14_spill] sm:$0xff] %v1833_v33  ;;  %3741 = vst [vmem:[#allocation15_spill] sm:$0xff] %v1839_v39  ;;  %v349_v46 = vadd.f32 %v1833_v33, %v1831_v32  ;;  %v1845_v48 = vadd.f32 %v157_v43, %v61_v41  ;;  %v155_v50 = vld [vmem:[#allocation5 + $0x68] sm:$0xff]  ;;  %v64_v51 = vld [vmem:[#allocation2 + $0x90] sm:$0xff]  ;;  %v346_v52 = vadd.f32 %v1839_v39, %v1837_v38 }
  0x32   :  { %3742 = vst [vmem:[#allocation16_spill] sm:$0xff] %v1843_v47  ;;  %338 = vadd.xlane.f32.xlu0 %v337_v37  ;;  %v1849_v53 = vadd.f32 %v154_v49, %v58_v44  ;;  %v1851_v54 = vadd.f32 %v155_v50, %v59_v45  ;;  %v65_v55 = vld [vmem:[#allocation2 + $0x98] sm:$0xff]  ;;  %v160_v56 = vld [vmem:[#allocation5 + $0x90] sm:$0xff]  ;;  %v62_v58 = vld [vmem:[#allocation2 + $0x80] sm:$0xff] }
  0x33   :  { %3743 = vst [vmem:[#allocation17_spill] sm:$0xff] %v1845_v48  ;;  %v161_v57 = vld [vmem:[#allocation5 + $0x98] sm:$0xff]  ;;  %v63_v59 = vld [vmem:[#allocation2 + $0x88] sm:$0xff]  ;;  %v158_v60 = vld [vmem:[#allocation5 + $0x80] sm:$0xff]  ;;  %v355_v62 = vadd.f32 %v1845_v48, %v1843_v47  ;;  %v1855_v63 = vadd.f32 %v160_v56, %v64_v51 }
  0x34   :  { %3744 = vst [vmem:[#allocation18_spill] sm:$0xff] %v1849_v53  ;;  %3745 = vst [vmem:[#allocation19_spill] sm:$0xff] %v1851_v54  ;;  %v159_v61 = vld [vmem:[#allocation5 + $0x88] sm:$0xff]  ;;  %350 = vadd.xlane.f32.xlu1 %v349_v46  ;;  %v1857_v0 = vadd.f32 %v161_v57, %v65_v55  ;;  %v68_v1 = vld [vmem:[#allocation2 + $0xb0] sm:$0xff]  ;;  %v352_v3 = vadd.f32 %v1851_v54, %v1849_v53  ;;  %v1861_v5 = vadd.f32 %v158_v60, %v62_v58 }
  0x35   :  { %3746 = vst [vmem:[#allocation20_spill] sm:$0xff] %v1855_v63  ;;  %v69_v2 = vld [vmem:[#allocation2 + $0xb8] sm:$0xff]  ;;  %v1863_v6 = vadd.f32 %v159_v61, %v63_v59  ;;  %v164_v8 = vld [vmem:[#allocation5 + $0xb0] sm:$0xff]  ;;  %v66_v10 = vld [vmem:[#allocation2 + $0xa0] sm:$0xff] }
  0x36   :  { %3747 = vst [vmem:[#allocation21_spill] sm:$0xff] %v1857_v0  ;;  %347 = vadd.xlane.f32.xlu0 %v346_v52  ;;  %3748 = vst [vmem:[#allocation22_spill] sm:$0xff] %v1861_v5  ;;  %v165_v9 = vld [vmem:[#allocation5 + $0xb8] sm:$0xff]  ;;  %v67_v13 = vld [vmem:[#allocation2 + $0xa8] sm:$0xff]  ;;  %v361_v16 = vadd.f32 %v1857_v0, %v1855_v63  ;;  %v1867_v19 = vadd.f32 %v164_v8, %v68_v1 }
  0x37   :  { %3749 = vst [vmem:[#allocation23_spill] sm:$0xff] %v1863_v6  ;;  %v162_v14 = vld [vmem:[#allocation5 + $0xa0] sm:$0xff]  ;;  %v163_v15 = vld [vmem:[#allocation5 + $0xa8] sm:$0xff]  ;;  %v1869_v20 = vadd.f32 %v165_v9, %v69_v2  ;;  %v72_v21 = vld [vmem:[#allocation2 + $0xd0] sm:$0xff]  ;;  %v358_v23 = vadd.f32 %v1863_v6, %v1861_v5 }
  0x38   :  { %356 = vadd.xlane.f32.xlu1 %v355_v62  ;;  %3750 = vst [vmem:[#allocation24_spill] sm:$0xff] %v1867_v19  ;;  %v73_v22 = vld [vmem:[#allocation2 + $0xd8] sm:$0xff]  ;;  %v1873_v25 = vadd.f32 %v162_v14, %v66_v10  ;;  %v1875_v26 = vadd.f32 %v163_v15, %v67_v13  ;;  %v168_v27 = vld [vmem:[#allocation5 + $0xd0] sm:$0xff]  ;;  %v70_v30 = vld [vmem:[#allocation2 + $0xc0] sm:$0xff] }
  0x39   :  { %3751 = vst [vmem:[#allocation25_spill] sm:$0xff] %v1869_v20  ;;  %v169_v29 = vld [vmem:[#allocation5 + $0xd8] sm:$0xff]  ;;  %v71_v31 = vld [vmem:[#allocation2 + $0xc8] sm:$0xff]  ;;  %v166_v34 = vld [vmem:[#allocation5 + $0xc0] sm:$0xff]  ;;  %v367_v36 = vadd.f32 %v1869_v20, %v1867_v19  ;;  %v1879_v37 = vadd.f32 %v168_v27, %v72_v21 }
  0x3a   :  { %353 = vadd.xlane.f32.xlu0 %v352_v3  ;;  %3752 = vst [vmem:[#allocation26_spill] sm:$0xff] %v1873_v25  ;;  %3753 = vst [vmem:[#allocation27_spill] sm:$0xff] %v1875_v26  ;;  %v167_v35 = vld [vmem:[#allocation5 + $0xc8] sm:$0xff]  ;;  %v1881_v40 = vadd.f32 %v169_v29, %v73_v22  ;;  %v76_v41 = vld [vmem:[#allocation2 + $0xf0] sm:$0xff]  ;;  %v364_v43 = vadd.f32 %v1875_v26, %v1873_v25  ;;  %v1885_v44 = vadd.f32 %v166_v34, %v70_v30 }
  0x3b   :  { %3754 = vst [vmem:[#allocation28_spill] sm:$0xff] %v1879_v37  ;;  %v77_v42 = vld [vmem:[#allocation2 + $0xf8] sm:$0xff]  ;;  %v1887_v45 = vadd.f32 %v167_v35, %v71_v31  ;;  %v172_v46 = vld [vmem:[#allocation5 + $0xf0] sm:$0xff]  ;;  %v74_v50 = vld [vmem:[#allocation2 + $0xe0] sm:$0xff] }
  0x3c   :  { %362 = vadd.xlane.f32.xlu1 %v361_v16  ;;  %3755 = vst [vmem:[#allocation29_spill] sm:$0xff] %v1881_v40  ;;  %3756 = vst [vmem:[#allocation30_spill] sm:$0xff] %v1885_v44  ;;  %v173_v49 = vld [vmem:[#allocation5 + $0xf8] sm:$0xff]  ;;  %v75_v51 = vld [vmem:[#allocation2 + $0xe8] sm:$0xff]  ;;  %v373_v56 = vadd.f32 %v1881_v40, %v1879_v37  ;;  %v1891_v57 = vadd.f32 %v172_v46, %v76_v41 }
  0x3d   :  { %3757 = vst [vmem:[#allocation31_spill] sm:$0xff] %v1887_v45  ;;  %v170_v52 = vld [vmem:[#allocation5 + $0xe0] sm:$0xff]  ;;  %v171_v55 = vld [vmem:[#allocation5 + $0xe8] sm:$0xff]  ;;  %v1893_v58 = vadd.f32 %v173_v49, %v77_v42  ;;  %v80_v59 = vld [vmem:[#allocation2 + $0x110] sm:$0xff]  ;;  %v370_v61 = vadd.f32 %v1887_v45, %v1885_v44 }
  0x3e   :  { %359 = vadd.xlane.f32.xlu0 %v358_v23  ;;  %3758 = vst [vmem:[#allocation32_spill] sm:$0xff] %v1891_v57  ;;  %v81_v60 = vld [vmem:[#allocation2 + $0x118] sm:$0xff]  ;;  %v1897_v62 = vadd.f32 %v170_v52, %v74_v50  ;;  %v1899_v1 = vadd.f32 %v171_v55, %v75_v51  ;;  %v176_v2 = vld [vmem:[#allocation5 + $0x110] sm:$0xff]  ;;  %v78_v8 = vld [vmem:[#allocation2 + $0x100] sm:$0xff] }
  0x3f   :  { %3759 = vst [vmem:[#allocation33_spill] sm:$0xff] %v1893_v58  ;;  %v177_v3 = vld [vmem:[#allocation5 + $0x118] sm:$0xff]  ;;  %v79_v9 = vld [vmem:[#allocation2 + $0x108] sm:$0xff]  ;;  %v174_v10 = vld [vmem:[#allocation5 + $0x100] sm:$0xff]  ;;  %v379_v14 = vadd.f32 %v1893_v58, %v1891_v57  ;;  %v1903_v15 = vadd.f32 %v176_v2, %v80_v59 }
  0x40   :  { %368 = vadd.xlane.f32.xlu1 %v367_v36  ;;  %3760 = vst [vmem:[#allocation34_spill] sm:$0xff] %v1897_v62  ;;  %3761 = vst [vmem:[#allocation35_spill] sm:$0xff] %v1899_v1  ;;  %v175_v13 = vld [vmem:[#allocation5 + $0x108] sm:$0xff]  ;;  %v1905_v16 = vadd.f32 %v177_v3, %v81_v60  ;;  %v84_v21 = vld [vmem:[#allocation2 + $0x130] sm:$0xff]  ;;  %v376_v23 = vadd.f32 %v1899_v1, %v1897_v62  ;;  %v1909_v27 = vadd.f32 %v174_v10, %v78_v8 }
  0x41   :  { %3762 = vst [vmem:[#allocation36_spill] sm:$0xff] %v1903_v15  ;;  %v85_v22 = vld [vmem:[#allocation2 + $0x138] sm:$0xff]  ;;  %v1911_v29 = vadd.f32 %v175_v13, %v79_v9  ;;  %v180_v30 = vld [vmem:[#allocation5 + $0x130] sm:$0xff]  ;;  %v82_v34 = vld [vmem:[#allocation2 + $0x120] sm:$0xff] }
  0x42   :  { %365 = vadd.xlane.f32.xlu0 %v364_v43  ;;  %3763 = vst [vmem:[#allocation37_spill] sm:$0xff] %v1905_v16  ;;  %3764 = vst [vmem:[#allocation38_spill] sm:$0xff] %v1909_v27  ;;  %v181_v31 = vld [vmem:[#allocation5 + $0x138] sm:$0xff]  ;;  %v83_v35 = vld [vmem:[#allocation2 + $0x128] sm:$0xff]  ;;  %v385_v42 = vadd.f32 %v1905_v16, %v1903_v15  ;;  %v1915_v43 = vadd.f32 %v180_v30, %v84_v21 }
  0x43   :  { %3765 = vst [vmem:[#allocation39_spill] sm:$0xff] %v1911_v29  ;;  %v178_v36 = vld [vmem:[#allocation5 + $0x120] sm:$0xff]  ;;  %v179_v41 = vld [vmem:[#allocation5 + $0x128] sm:$0xff]  ;;  %v1917_v46 = vadd.f32 %v181_v31, %v85_v22  ;;  %v88_v49 = vld [vmem:[#allocation2 + $0x150] sm:$0xff]  ;;  %v382_v51 = vadd.f32 %v1911_v29, %v1909_v27 }
  0x44   :  { %374 = vadd.xlane.f32.xlu1 %v373_v56  ;;  %3766 = vst [vmem:[#allocation40_spill] sm:$0xff] %v1915_v43  ;;  %v89_v50 = vld [vmem:[#allocation2 + $0x158] sm:$0xff]  ;;  %v1921_v52 = vadd.f32 %v178_v36, %v82_v34  ;;  %v1923_v55 = vadd.f32 %v179_v41, %v83_v35  ;;  %v184_v56 = vld [vmem:[#allocation5 + $0x150] sm:$0xff]  ;;  %v86_v60 = vld [vmem:[#allocation2 + $0x140] sm:$0xff] }
  0x45   :  { %3767 = vst [vmem:[#allocation41_spill] sm:$0xff] %v1917_v46  ;;  %v185_v59 = vld [vmem:[#allocation5 + $0x158] sm:$0xff]  ;;  %v182_v2 = vld [vmem:[#allocation5 + $0x140] sm:$0xff]  ;;  %v183_v3 = vld [vmem:[#allocation5 + $0x148] sm:$0xff]  ;;  %v391_v8 = vadd.f32 %v1917_v46, %v1915_v43  ;;  %v1927_v9 = vadd.f32 %v184_v56, %v88_v49 }
  0x46   :  { %371 = vadd.xlane.f32.xlu0 %v370_v61  ;;  %3768 = vst [vmem:[#allocation42_spill] sm:$0xff] %v1921_v52  ;;  %3769 = vst [vmem:[#allocation43_spill] sm:$0xff] %v1923_v55  ;;  %v87_v61 = vld [vmem:[#allocation2 + $0x148] sm:$0xff]  ;;  %v1929_v10 = vadd.f32 %v185_v59, %v89_v50  ;;  %v92_v13 = vld [vmem:[#allocation2 + $0x170] sm:$0xff]  ;;  %v388_v21 = vadd.f32 %v1923_v55, %v1921_v52  ;;  %v1933_v22 = vadd.f32 %v182_v2, %v86_v60 }
  0x47   :  { %3770 = vst [vmem:[#allocation44_spill] sm:$0xff] %v1927_v9  ;;  %v188_v30 = vld [vmem:[#allocation5 + $0x170] sm:$0xff]  ;;  %v189_v31 = vld [vmem:[#allocation5 + $0x178] sm:$0xff]  ;;  %v90_v34 = vld [vmem:[#allocation2 + $0x160] sm:$0xff] }
  0x48   :  { %380 = vadd.xlane.f32.xlu1 %v379_v14  ;;  %3771 = vst [vmem:[#allocation45_spill] sm:$0xff] %v1929_v10  ;;  %v93_v14 = vld [vmem:[#allocation2 + $0x178] sm:$0xff]  ;;  %3772 = vst [vmem:[#allocation46_spill] sm:$0xff] %v1933_v22  ;;  %v91_v35 = vld [vmem:[#allocation2 + $0x168] sm:$0xff]  ;;  %v1939_v49 = vadd.f32 %v188_v30, %v92_v13 }
  0x49   :  { %v186_v36 = vld [vmem:[#allocation5 + $0x160] sm:$0xff]  ;;  %v187_v41 = vld [vmem:[#allocation5 + $0x168] sm:$0xff]  ;;  %v1941_v50 = vadd.f32 %v189_v31, %v93_v14  ;;  %v97_v56 = vld [vmem:[#allocation2 + $0x198] sm:$0xff] }
  0x4a   :  { %377 = vadd.xlane.f32.xlu0 %v376_v23  ;;  %v1935_v23 = vadd.f32 %v183_v3, %v87_v61  ;;  %3774 = vst [vmem:[#allocation48_spill] sm:$0xff] %v1939_v49  ;;  %v1945_v60 = vadd.f32 %v186_v36, %v90_v34  ;;  %v1947_v61 = vadd.f32 %v187_v41, %v91_v35  ;;  %v192_v2 = vld [vmem:[#allocation5 + $0x190] sm:$0xff]  ;;  %v193_v3 = vld [vmem:[#allocation5 + $0x198] sm:$0xff]  ;;  %v95_v55 = vld [vmem:[#allocation2 + $0x188] sm:$0xff] }
  0x4b   :  { %3775 = vst [vmem:[#allocation49_spill] sm:$0xff] %v1941_v50  ;;  %v190_v52 = vld [vmem:[#allocation5 + $0x180] sm:$0xff]  ;;  %v403_v13 = vadd.f32 %v1941_v50, %v1939_v49  ;;  %v100_v30 = vld [vmem:[#allocation2 + $0x1b0] sm:$0xff]  ;;  %v101_v31 = vld [vmem:[#allocation2 + $0x1b8] sm:$0xff] }
  0x4c   :  { %386 = vadd.xlane.f32.xlu1 %v385_v42  ;;  %3773 = vst [vmem:[#allocation47_spill] sm:$0xff] %v1935_v23  ;;  %v397_v42 = vadd.f32 %v1929_v10, %v1927_v9  ;;  %v394_v59 = vadd.f32 %v1935_v23, %v1933_v22  ;;  %3776 = vst [vmem:[#allocation50_spill] sm:$0xff] %v1945_v60  ;;  %v191_v10 = vld [vmem:[#allocation5 + $0x188] sm:$0xff]  ;;  %v400_v34 = vadd.f32 %v1947_v61, %v1945_v60  ;;  %v196_v41 = vld [vmem:[#allocation5 + $0x1b0] sm:$0xff] }
  0x4d   :  { %3777 = vst [vmem:[#allocation51_spill] sm:$0xff] %v1947_v61  ;;  %v1959_v36 = vadd.f32 %v191_v10, %v95_v55  ;;  %v197_v23 = vld [vmem:[#allocation5 + $0x1b8] sm:$0xff]  ;;  %v99_v22 = vld [vmem:[#allocation2 + $0x1a8] sm:$0xff]  ;;  %v194_v9 = vld [vmem:[#allocation5 + $0x1a0] sm:$0xff] }
  0x4e   :  { %383 = vadd.xlane.f32.xlu0 %v382_v51  ;;  %v96_v51 = vld [vmem:[#allocation2 + $0x190] sm:$0xff]  ;;  %v195_v50 = vld [vmem:[#allocation5 + $0x1a8] sm:$0xff]  ;;  %v201_v61 = vld [vmem:[#allocation5 + $0x1d8] sm:$0xff] }
  0x4f   :  { %v1951_v14 = vadd.f32 %v192_v2, %v96_v51  ;;  %3781 = vst [vmem:[#allocation55_spill] sm:$0xff] %v1959_v36  ;;  %v104_v2 = vld [vmem:[#allocation2 + $0x1d0] sm:$0xff]  ;;  %v1971_v10 = vadd.f32 %v195_v50, %v99_v22  ;;  %v103_v60 = vld [vmem:[#allocation2 + $0x1c8] sm:$0xff]  ;;  %v198_v49 = vld [vmem:[#allocation5 + $0x1c0] sm:$0xff] }
  0x50   :  { %392 = vadd.xlane.f32.xlu1 %v391_v8  ;;  %v94_v8 = vld [vmem:[#allocation2 + $0x180] sm:$0xff] }
  0x51   :  { %3778 = vst [vmem:[#allocation52_spill] sm:$0xff] %v1951_v14  ;;  %v1957_v35 = vadd.f32 %v190_v52, %v94_v8  ;;  %3785 = vst [vmem:[#allocation59_spill] sm:$0xff] %v1971_v10  ;;  %v200_v8 = vld [vmem:[#allocation5 + $0x1d0] sm:$0xff] }
  0x52   :  { %389 = vadd.xlane.f32.xlu0 %v388_v21  ;;  %v1953_v21 = vadd.f32 %v193_v3, %v97_v56  ;;  %v1963_v56 = vadd.f32 %v196_v41, %v100_v30  ;;  %v105_v3 = vld [vmem:[#allocation2 + $0x1d8] sm:$0xff]  ;;  %v1975_v30 = vadd.f32 %v200_v8, %v104_v2 }
  0x53   :  { %3780 = vst [vmem:[#allocation54_spill] sm:$0xff] %v1957_v35  ;;  %v406_v52 = vadd.f32 %v1959_v36, %v1957_v35  ;;  %v109_v41 = vld [vmem:[#allocation2 + $0x1f8] sm:$0xff]  ;;  %v107_v35 = vld [vmem:[#allocation2 + $0x1e8] sm:$0xff] }
  0x54   :  { %398 = vadd.xlane.f32.xlu1 %v397_v42  ;;  %3779 = vst [vmem:[#allocation53_spill] sm:$0xff] %v1953_v21  ;;  %v98_v42 = vld [vmem:[#allocation2 + $0x1a0] sm:$0xff]  ;;  %v409_v51 = vadd.f32 %v1953_v21, %v1951_v14  ;;  %3782 = vst [vmem:[#allocation56_spill] sm:$0xff] %v1963_v56  ;;  %v199_v21 = vld [vmem:[#allocation5 + $0x1c8] sm:$0xff] }
  0x55   :  { %v1969_v55 = vadd.f32 %v194_v9, %v98_v42  ;;  %3786 = vst [vmem:[#allocation60_spill] sm:$0xff] %v1975_v30  ;;  %v1983_v50 = vadd.f32 %v199_v21, %v103_v60  ;;  %v204_v42 = vld [vmem:[#allocation5 + $0x1f0] sm:$0xff]  ;;  %v205_v36 = vld [vmem:[#allocation5 + $0x1f8] sm:$0xff]  ;;  %v202_v14 = vld [vmem:[#allocation5 + $0x1e0] sm:$0xff] }
  0x56   :  { %395 = vadd.xlane.f32.xlu0 %v394_v59  ;;  %v1965_v59 = vadd.f32 %v197_v23, %v101_v31  ;;  %v1977_v31 = vadd.f32 %v201_v61, %v105_v3  ;;  %v1989_v3 = vadd.f32 %v205_v36, %v109_v41  ;;  %v113_v8 = vld [vmem:[#allocation2 + $0x218] sm:$0xff] }
  0x57   :  { %3784 = vst [vmem:[#allocation58_spill] sm:$0xff] %v1969_v55  ;;  %v412_v9 = vadd.f32 %v1971_v10, %v1969_v55  ;;  %3789 = vst [vmem:[#allocation63_spill] sm:$0xff] %v1983_v50  ;;  %v209_v10 = vld [vmem:[#allocation5 + $0x218] sm:$0xff]  ;;  %v111_v55 = vld [vmem:[#allocation2 + $0x208] sm:$0xff] }
  0x58   :  { %404 = vadd.xlane.f32.xlu1 %v403_v13  ;;  %3783 = vst [vmem:[#allocation57_spill] sm:$0xff] %v1965_v59  ;;  %v102_v13 = vld [vmem:[#allocation2 + $0x1c0] sm:$0xff]  ;;  %v415_v23 = vadd.f32 %v1965_v59, %v1963_v56  ;;  %3787 = vst [vmem:[#allocation61_spill] sm:$0xff] %v1977_v31  ;;  %v203_v59 = vld [vmem:[#allocation5 + $0x1e8] sm:$0xff]  ;;  %v421_v61 = vadd.f32 %v1977_v31, %v1975_v30  ;;  %v2001_v41 = vadd.f32 %v209_v10, %v113_v8 }
  0x59   :  { %v1981_v22 = vadd.f32 %v198_v49, %v102_v13  ;;  %3791 = vst [vmem:[#allocation65_spill] sm:$0xff] %v1989_v3  ;;  %v1995_v21 = vadd.f32 %v203_v59, %v107_v35  ;;  %v208_v13 = vld [vmem:[#allocation5 + $0x210] sm:$0xff]  ;;  %v206_v56 = vld [vmem:[#allocation5 + $0x200] sm:$0xff]  ;;  %v207_v31 = vld [vmem:[#allocation5 + $0x208] sm:$0xff] }
  0x5a   :  { %401 = vadd.xlane.f32.xlu0 %v400_v34  ;;  %v108_v34 = vld [vmem:[#allocation2 + $0x1f0] sm:$0xff]  ;;  %3795 = vst [vmem:[#allocation69_spill] sm:$0xff] %v2001_v41  ;;  %v2007_v59 = vadd.f32 %v207_v31, %v111_v55  ;;  %v210_v30 = vld [vmem:[#allocation5 + $0x220] sm:$0xff] }
  0x5b   :  { %3788 = vst [vmem:[#allocation62_spill] sm:$0xff] %v1981_v22  ;;  %v1987_v2 = vadd.f32 %v204_v42, %v108_v34  ;;  %v418_v49 = vadd.f32 %v1983_v50, %v1981_v22  ;;  %3793 = vst [vmem:[#allocation67_spill] sm:$0xff] %v1995_v21  ;;  %v117_v42 = vld [vmem:[#allocation2 + $0x238] sm:$0xff]  ;;  %v115_v22 = vld [vmem:[#allocation2 + $0x228] sm:$0xff] }
  0x5c   :  { %410 = vadd.xlane.f32.xlu1 %v409_v51  ;;  %v106_v51 = vld [vmem:[#allocation2 + $0x1e0] sm:$0xff]  ;;  %3797 = vst [vmem:[#allocation71_spill] sm:$0xff] %v2007_v59  ;;  %v213_v50 = vld [vmem:[#allocation5 + $0x238] sm:$0xff] }
  0x5d   :  { %3790 = vst [vmem:[#allocation64_spill] sm:$0xff] %v1987_v2  ;;  %v1993_v60 = vadd.f32 %v202_v14, %v106_v51  ;;  %v427_v36 = vadd.f32 %v1989_v3, %v1987_v2  ;;  %v212_v51 = vld [vmem:[#allocation5 + $0x230] sm:$0xff]  ;;  %v211_v3 = vld [vmem:[#allocation5 + $0x228] sm:$0xff]  ;;  %v2013_v8 = vadd.f32 %v213_v50, %v117_v42  ;;  %v214_v2 = vld [vmem:[#allocation5 + $0x240] sm:$0xff] }
  0x5e   :  { %407 = vadd.xlane.f32.xlu0 %v406_v52  ;;  %v112_v52 = vld [vmem:[#allocation2 + $0x210] sm:$0xff]  ;;  %v2019_v31 = vadd.f32 %v211_v3, %v115_v22 }
  0x5f   :  { %3792 = vst [vmem:[#allocation66_spill] sm:$0xff] %v1993_v60  ;;  %v1999_v34 = vadd.f32 %v208_v13, %v112_v52  ;;  %v424_v14 = vadd.f32 %v1995_v21, %v1993_v60  ;;  %3799 = vst [vmem:[#allocation73_spill] sm:$0xff] %v2013_v8  ;;  %v121_v13 = vld [vmem:[#allocation2 + $0x258] sm:$0xff]  ;;  %v119_v60 = vld [vmem:[#allocation2 + $0x248] sm:$0xff] }
  0x60   :  { %416 = vadd.xlane.f32.xlu1 %v415_v23  ;;  %v110_v23 = vld [vmem:[#allocation2 + $0x200] sm:$0xff]  ;;  %3801 = vst [vmem:[#allocation75_spill] sm:$0xff] %v2019_v31  ;;  %v217_v21 = vld [vmem:[#allocation5 + $0x258] sm:$0xff] }
  0x61   :  { %3794 = vst [vmem:[#allocation68_spill] sm:$0xff] %v1999_v34  ;;  %v2005_v35 = vadd.f32 %v206_v56, %v110_v23  ;;  %v433_v10 = vadd.f32 %v2001_v41, %v1999_v34  ;;  %v216_v23 = vld [vmem:[#allocation5 + $0x250] sm:$0xff]  ;;  %v215_v41 = vld [vmem:[#allocation5 + $0x248] sm:$0xff]  ;;  %v2025_v42 = vadd.f32 %v217_v21, %v121_v13  ;;  %v218_v34 = vld [vmem:[#allocation5 + $0x260] sm:$0xff] }
  0x62   :  { %413 = vadd.xlane.f32.xlu0 %v412_v9  ;;  %v116_v9 = vld [vmem:[#allocation2 + $0x230] sm:$0xff]  ;;  %v2031_v3 = vadd.f32 %v215_v41, %v119_v60 }
  0x63   :  { %3796 = vst [vmem:[#allocation70_spill] sm:$0xff] %v2005_v35  ;;  %v2011_v52 = vadd.f32 %v212_v51, %v116_v9  ;;  %v430_v56 = vadd.f32 %v2007_v59, %v2005_v35  ;;  %3803 = vst [vmem:[#allocation77_spill] sm:$0xff] %v2025_v42  ;;  %v125_v51 = vld [vmem:[#allocation2 + $0x278] sm:$0xff]  ;;  %v123_v35 = vld [vmem:[#allocation2 + $0x268] sm:$0xff] }
  0x64   :  { %422 = vadd.xlane.f32.xlu1 %v421_v61  ;;  %v114_v61 = vld [vmem:[#allocation2 + $0x220] sm:$0xff]  ;;  %3805 = vst [vmem:[#allocation79_spill] sm:$0xff] %v2031_v3  ;;  %v221_v59 = vld [vmem:[#allocation5 + $0x278] sm:$0xff] }
  0x65   :  { %3798 = vst [vmem:[#allocation72_spill] sm:$0xff] %v2011_v52  ;;  %v2017_v55 = vadd.f32 %v210_v30, %v114_v61  ;;  %v439_v50 = vadd.f32 %v2013_v8, %v2011_v52  ;;  %v220_v61 = vld [vmem:[#allocation5 + $0x270] sm:$0xff]  ;;  %v219_v8 = vld [vmem:[#allocation5 + $0x268] sm:$0xff]  ;;  %v2037_v13 = vadd.f32 %v221_v59, %v125_v51  ;;  %v222_v52 = vld [vmem:[#allocation5 + $0x280] sm:$0xff] }
  0x66   :  { %419 = vadd.xlane.f32.xlu0 %v418_v49  ;;  %v120_v49 = vld [vmem:[#allocation2 + $0x250] sm:$0xff]  ;;  %v2043_v41 = vadd.f32 %v219_v8, %v123_v35 }
  0x67   :  { %3800 = vst [vmem:[#allocation74_spill] sm:$0xff] %v2017_v55  ;;  %v2023_v9 = vadd.f32 %v216_v23, %v120_v49  ;;  %v436_v30 = vadd.f32 %v2019_v31, %v2017_v55  ;;  %3807 = vst [vmem:[#allocation81_spill] sm:$0xff] %v2037_v13  ;;  %v129_v23 = vld [vmem:[#allocation2 + $0x298] sm:$0xff]  ;;  %v127_v55 = vld [vmem:[#allocation2 + $0x288] sm:$0xff] }
  0x68   :  { %428 = vadd.xlane.f32.xlu1 %v427_v36  ;;  %v118_v36 = vld [vmem:[#allocation2 + $0x240] sm:$0xff]  ;;  %3809 = vst [vmem:[#allocation83_spill] sm:$0xff] %v2043_v41  ;;  %v225_v31 = vld [vmem:[#allocation5 + $0x298] sm:$0xff] }
  0x69   :  { %3802 = vst [vmem:[#allocation76_spill] sm:$0xff] %v2023_v9  ;;  %v2029_v22 = vadd.f32 %v214_v2, %v118_v36  ;;  %v445_v21 = vadd.f32 %v2025_v42, %v2023_v9  ;;  %v224_v36 = vld [vmem:[#allocation5 + $0x290] sm:$0xff]  ;;  %v223_v42 = vld [vmem:[#allocation5 + $0x288] sm:$0xff]  ;;  %v2049_v51 = vadd.f32 %v225_v31, %v129_v23  ;;  %v226_v9 = vld [vmem:[#allocation5 + $0x2a0] sm:$0xff] }
  0x6a   :  { %425 = vadd.xlane.f32.xlu0 %v424_v14  ;;  %v124_v14 = vld [vmem:[#allocation2 + $0x270] sm:$0xff]  ;;  %v2055_v8 = vadd.f32 %v223_v42, %v127_v55 }
  0x6b   :  { %3804 = vst [vmem:[#allocation78_spill] sm:$0xff] %v2029_v22  ;;  %v2035_v49 = vadd.f32 %v220_v61, %v124_v14  ;;  %v442_v2 = vadd.f32 %v2031_v3, %v2029_v22  ;;  %3811 = vst [vmem:[#allocation85_spill] sm:$0xff] %v2049_v51  ;;  %v133_v61 = vld [vmem:[#allocation2 + $0x2b8] sm:$0xff]  ;;  %v131_v22 = vld [vmem:[#allocation2 + $0x2a8] sm:$0xff] }
  0x6c   :  { %434 = vadd.xlane.f32.xlu1 %v433_v10  ;;  %v122_v10 = vld [vmem:[#allocation2 + $0x260] sm:$0xff]  ;;  %3813 = vst [vmem:[#allocation87_spill] sm:$0xff] %v2055_v8  ;;  %v229_v3 = vld [vmem:[#allocation5 + $0x2b8] sm:$0xff] }
  0x6d   :  { %3806 = vst [vmem:[#allocation80_spill] sm:$0xff] %v2035_v49  ;;  %v2041_v60 = vadd.f32 %v218_v34, %v122_v10  ;;  %v451_v59 = vadd.f32 %v2037_v13, %v2035_v49  ;;  %v228_v10 = vld [vmem:[#allocation5 + $0x2b0] sm:$0xff]  ;;  %v227_v13 = vld [vmem:[#allocation5 + $0x2a8] sm:$0xff]  ;;  %v2061_v23 = vadd.f32 %v229_v3, %v133_v61  ;;  %v230_v49 = vld [vmem:[#allocation5 + $0x2c0] sm:$0xff] }
  0x6e   :  { %431 = vadd.xlane.f32.xlu0 %v430_v56  ;;  %v128_v56 = vld [vmem:[#allocation2 + $0x290] sm:$0xff]  ;;  %v2067_v42 = vadd.f32 %v227_v13, %v131_v22 }
  0x6f   :  { %3808 = vst [vmem:[#allocation82_spill] sm:$0xff] %v2041_v60  ;;  %v2047_v14 = vadd.f32 %v224_v36, %v128_v56  ;;  %v448_v34 = vadd.f32 %v2043_v41, %v2041_v60  ;;  %3815 = vst [vmem:[#allocation89_spill] sm:$0xff] %v2061_v23  ;;  %v137_v36 = vld [vmem:[#allocation2 + $0x2d8] sm:$0xff]  ;;  %v135_v60 = vld [vmem:[#allocation2 + $0x2c8] sm:$0xff] }
  0x70   :  { %440 = vadd.xlane.f32.xlu1 %v439_v50  ;;  %v126_v50 = vld [vmem:[#allocation2 + $0x280] sm:$0xff]  ;;  %3817 = vst [vmem:[#allocation91_spill] sm:$0xff] %v2067_v42  ;;  %v233_v41 = vld [vmem:[#allocation5 + $0x2d8] sm:$0xff] }
  0x71   :  { %3810 = vst [vmem:[#allocation84_spill] sm:$0xff] %v2047_v14  ;;  %v2053_v35 = vadd.f32 %v222_v52, %v126_v50  ;;  %v457_v31 = vadd.f32 %v2049_v51, %v2047_v14  ;;  %v232_v50 = vld [vmem:[#allocation5 + $0x2d0] sm:$0xff]  ;;  %v231_v51 = vld [vmem:[#allocation5 + $0x2c8] sm:$0xff]  ;;  %v2073_v61 = vadd.f32 %v233_v41, %v137_v36  ;;  %v234_v14 = vld [vmem:[#allocation5 + $0x2e0] sm:$0xff] }
  0x72   :  { %437 = vadd.xlane.f32.xlu0 %v436_v30  ;;  %v132_v30 = vld [vmem:[#allocation2 + $0x2b0] sm:$0xff]  ;;  %v2079_v13 = vadd.f32 %v231_v51, %v135_v60 }
  0x73   :  { %3812 = vst [vmem:[#allocation86_spill] sm:$0xff] %v2053_v35  ;;  %v2059_v56 = vadd.f32 %v228_v10, %v132_v30  ;;  %v454_v52 = vadd.f32 %v2055_v8, %v2053_v35  ;;  %3819 = vst [vmem:[#allocation93_spill] sm:$0xff] %v2073_v61  ;;  %v141_v10 = vld [vmem:[#allocation2 + $0x2f8] sm:$0xff]  ;;  %v139_v35 = vld [vmem:[#allocation2 + $0x2e8] sm:$0xff] }
  0x74   :  { %446 = vadd.xlane.f32.xlu1 %v445_v21  ;;  %v130_v21 = vld [vmem:[#allocation2 + $0x2a0] sm:$0xff]  ;;  %3821 = vst [vmem:[#allocation95_spill] sm:$0xff] %v2079_v13  ;;  %v237_v8 = vld [vmem:[#allocation5 + $0x2f8] sm:$0xff] }
  0x75   :  { %3814 = vst [vmem:[#allocation88_spill] sm:$0xff] %v2059_v56  ;;  %v2065_v55 = vadd.f32 %v226_v9, %v130_v21  ;;  %v463_v3 = vadd.f32 %v2061_v23, %v2059_v56  ;;  %v236_v21 = vld [vmem:[#allocation5 + $0x2f0] sm:$0xff]  ;;  %v235_v23 = vld [vmem:[#allocation5 + $0x2e8] sm:$0xff]  ;;  %v2085_v36 = vadd.f32 %v237_v8, %v141_v10 }
  0x76   :  { %443 = vadd.xlane.f32.xlu0 %v442_v2  ;;  %v136_v2 = vld [vmem:[#allocation2 + $0x2d0] sm:$0xff]  ;;  %v2091_v51 = vadd.f32 %v235_v23, %v139_v35  ;;  %v479_v35 = vmul.f32 %v1815_v12, %v1815_v12 }
  0x77   :  { %3816 = vst [vmem:[#allocation90_spill] sm:$0xff] %v2065_v55  ;;  %v2071_v30 = vadd.f32 %v232_v50, %v136_v2  ;;  %v460_v9 = vadd.f32 %v2067_v42, %v2065_v55  ;;  %3823 = vst [vmem:[#allocation97_spill] sm:$0xff] %v2085_v36  ;;  %v480_v50 = vmul.f32 %v1825_v24, %v1825_v24 }
  0x78   :  { %452 = vadd.xlane.f32.xlu1 %v451_v59  ;;  %v134_v59 = vld [vmem:[#allocation2 + $0x2c0] sm:$0xff]  ;;  %3825 = vst [vmem:[#allocation99_spill] sm:$0xff] %v2091_v51 }
  0x79   :  { %3818 = vst [vmem:[#allocation92_spill] sm:$0xff] %v2071_v30  ;;  %v2077_v22 = vadd.f32 %v230_v49, %v134_v59  ;;  %v469_v41 = vadd.f32 %v2073_v61, %v2071_v30  ;;  %v481_v59 = vmul.f32 %v1829_v28, %v1829_v28 }
  0x7a   :  { %449 = vadd.xlane.f32.xlu0 %v448_v34  ;;  %v140_v34 = vld [vmem:[#allocation2 + $0x2f0] sm:$0xff] }
  0x7b   :  { %3820 = vst [vmem:[#allocation94_spill] sm:$0xff] %v2077_v22  ;;  %v2083_v2 = vadd.f32 %v236_v21, %v140_v34  ;;  %v466_v49 = vadd.f32 %v2079_v13, %v2077_v22  ;;  %v577_v23 = vadd.f32 %v481_v59, %v480_v50  ;;  %v485_v34 = vmul.f32 %v1821_v18, %v1821_v18 }
  0x7c   :  { %458 = vadd.xlane.f32.xlu1 %v457_v31  ;;  %v138_v31 = vld [vmem:[#allocation2 + $0x2e0] sm:$0xff]  ;;  %v483_v21 = vmul.f32 %v1811_v7, %v1811_v7  ;;  %v486_v50 = vmul.f32 %v1837_v38, %v1837_v38  ;;  %v487_v59 = vmul.f32 %v1839_v39, %v1839_v39 }
  0x7d   :  { %3822 = vst [vmem:[#allocation96_spill] sm:$0xff] %v2083_v2  ;;  %v2089_v60 = vadd.f32 %v234_v14, %v138_v31  ;;  %v478_v14 = vmul.f32 %v1813_v11, %v1813_v11 }
  0x7e   :  { %455 = vadd.xlane.f32.xlu0 %v454_v52  ;;  %v475_v52 = vadd.f32 %v2085_v36, %v2083_v2 }
  0x7f   :  { %3824 = vst [vmem:[#allocation98_spill] sm:$0xff] %v2089_v60  ;;  %v472_v8 = vadd.f32 %v2091_v51, %v2089_v60  ;;  %v574_v10 = vadd.f32 %v479_v35, %v478_v14  ;;  %v492_v14 = vmul.f32 %v1843_v47, %v1843_v47  ;;  %v493_v35 = vmul.f32 %v1845_v48, %v1845_v48 }
  0x80   :  { %464 = vadd.xlane.f32.xlu1 %v463_v3  ;;  %v484_v3 = vmul.f32 %v1819_v17, %v1819_v17 }
  0x82   :  { %461 = vadd.xlane.f32.xlu0 %v460_v9  ;;  %v482_v9 = vmul.f32 %v1809_v4, %v1809_v4  ;;  %v583_v31 = vadd.f32 %v485_v34, %v484_v3  ;;  %v490_v3 = vmul.f32 %v1849_v53, %v1849_v53  ;;  %v491_v34 = vmul.f32 %v1851_v54, %v1851_v54 }
  0x84   :  { %470 = vadd.xlane.f32.xlu1 %v469_v41  ;;  %v488_v41 = vmul.f32 %v1831_v32, %v1831_v32 }
  0x86   :  { %467 = vadd.xlane.f32.xlu0 %v466_v49  ;;  %v489_v49 = vmul.f32 %v1833_v33, %v1833_v33 }
  0x88   :  { %476 = vadd.xlane.f32.xlu1 %v475_v52  ;;  %v580_v52 = vadd.f32 %v483_v21, %v482_v9  ;;  %v496_v9 = vmul.f32 %v1855_v63, %v1855_v63  ;;  %v497_v21 = vmul.f32 %v1857_v0, %v1857_v0 }
  0x8a   :  { %473 = vadd.xlane.f32.xlu0 %v472_v8  ;;  %v589_v8 = vadd.f32 %v489_v49, %v488_v41  ;;  %v494_v41 = vmul.f32 %v1861_v5, %v1861_v5  ;;  %v495_v49 = vmul.f32 %v1863_v6, %v1863_v6 }
  0x8c   :  { %578 = vadd.xlane.f32.xlu1 %v577_v23  ;;  %v586_v23 = vadd.f32 %v487_v59, %v486_v50  ;;  %v500_v50 = vmul.f32 %v1867_v19, %v1867_v19  ;;  %v501_v59 = vmul.f32 %v1869_v20, %v1869_v20 }
  0x8e   :  { %575 = vadd.xlane.f32.xlu0 %v574_v10  ;;  %v595_v10 = vadd.f32 %v493_v35, %v492_v14  ;;  %v498_v14 = vmul.f32 %v1873_v25, %v1873_v25  ;;  %v499_v35 = vmul.f32 %v1875_v26, %v1875_v26  ;;  %v3871_v25 = vld [vmem:[#allocation87_spill] sm:$0xff] }
  0x90   :  { %584 = vadd.xlane.f32.xlu1 %v583_v31  ;;  %v592_v31 = vadd.f32 %v491_v34, %v490_v3  ;;  %v504_v3 = vmul.f32 %v1879_v37, %v1879_v37  ;;  %v505_v34 = vmul.f32 %v1881_v40, %v1881_v40  ;;  %v3867_v37 = vld [vmem:[#allocation83_spill] sm:$0xff] }
  0x92   :  { %581 = vadd.xlane.f32.xlu0 %v580_v52  ;;  %v601_v52 = vadd.f32 %v497_v21, %v496_v9  ;;  %v502_v9 = vmul.f32 %v1885_v44, %v1885_v44  ;;  %v503_v21 = vmul.f32 %v1887_v45, %v1887_v45  ;;  %v3863_v44 = vld [vmem:[#allocation79_spill] sm:$0xff] }
  0x94   :  { %590 = vadd.xlane.f32.xlu1 %v589_v8  ;;  %v598_v8 = vadd.f32 %v495_v49, %v494_v41  ;;  %v508_v41 = vmul.f32 %v1891_v57, %v1891_v57  ;;  %v509_v49 = vmul.f32 %v1893_v58, %v1893_v58  ;;  %v3859_v57 = vld [vmem:[#allocation75_spill] sm:$0xff] }
  0x96   :  { %587 = vadd.xlane.f32.xlu0 %v586_v23  ;;  %v607_v23 = vadd.f32 %v501_v59, %v500_v50  ;;  %v506_v50 = vmul.f32 %v1897_v62, %v1897_v62  ;;  %v507_v59 = vmul.f32 %v1899_v1, %v1899_v1  ;;  %v3855_v62 = vld [vmem:[#allocation71_spill] sm:$0xff] }
  0x98   :  { %596 = vadd.xlane.f32.xlu1 %v595_v10  ;;  %v604_v10 = vadd.f32 %v499_v35, %v498_v14  ;;  %v512_v14 = vmul.f32 %v1903_v15, %v1903_v15  ;;  %v513_v35 = vmul.f32 %v1905_v16, %v1905_v16  ;;  %v3851_v15 = vld [vmem:[#allocation67_spill] sm:$0xff] }
  0x9a   :  { %593 = vadd.xlane.f32.xlu0 %v592_v31  ;;  %v613_v31 = vadd.f32 %v505_v34, %v504_v3  ;;  %v510_v3 = vmul.f32 %v1909_v27, %v1909_v27  ;;  %v511_v34 = vmul.f32 %v1911_v29, %v1911_v29  ;;  %v3828_v27 = vld [vmem:[#allocation44_spill] sm:$0xff]  ;;  %v3830_v29 = vld [vmem:[#allocation46_spill] sm:$0xff] }
  0x9c   :  { %602 = vadd.xlane.f32.xlu1 %v601_v52  ;;  %v610_v52 = vadd.f32 %v503_v21, %v502_v9  ;;  %v516_v9 = vmul.f32 %v1915_v43, %v1915_v43  ;;  %v517_v21 = vmul.f32 %v1917_v46, %v1917_v46  ;;  %v3832_v46 = vld [vmem:[#allocation48_spill] sm:$0xff] }
  0x9e   :  { %599 = vadd.xlane.f32.xlu0 %v598_v8  ;;  %v619_v8 = vadd.f32 %v509_v49, %v508_v41  ;;  %v3826_v41 = vld [vmem:[#allocation42_spill] sm:$0xff] }
  0x9f   :  { %v514_v49 = vmul.f32 %v3826_v41, %v3826_v41 }
  0xa0   :  { %608 = vadd.xlane.f32.xlu1 %v607_v23  ;;  %v616_v23 = vadd.f32 %v507_v59, %v506_v50  ;;  %v631_v59 = vadd.f32 %v517_v21, %v516_v9  ;;  %v3833_v9 = vld [vmem:[#allocation49_spill] sm:$0xff] }
  0xa1   :  { %v525_v21 = vmul.f32 %v3833_v9, %v3833_v9  ;;  %v3840_v9 = vld [vmem:[#allocation56_spill] sm:$0xff] }
  0xa2   :  { %605 = vadd.xlane.f32.xlu0 %v604_v10  ;;  %v625_v10 = vadd.f32 %v513_v35, %v512_v14  ;;  %v3829_v14 = vld [vmem:[#allocation45_spill] sm:$0xff] }
  0xa3   :  { %v521_v35 = vmul.f32 %v3829_v14, %v3829_v14  ;;  %v3836_v14 = vld [vmem:[#allocation52_spill] sm:$0xff] }
  0xa4   :  { %614 = vadd.xlane.f32.xlu1 %v613_v31  ;;  %v622_v31 = vadd.f32 %v511_v34, %v510_v3  ;;  %v3831_v3 = vld [vmem:[#allocation47_spill] sm:$0xff] }
  0xa5   :  { %v519_v34 = vmul.f32 %v3831_v3, %v3831_v3  ;;  %v3838_v3 = vld [vmem:[#allocation54_spill] sm:$0xff] }
  0xa6   :  { %611 = vadd.xlane.f32.xlu0 %v610_v52  ;;  %v3827_v52 = vld [vmem:[#allocation43_spill] sm:$0xff] }
  0xa7   :  { %v515_v50 = vmul.f32 %v3827_v52, %v3827_v52  ;;  %v3834_v52 = vld [vmem:[#allocation50_spill] sm:$0xff] }
  0xa8   :  { %620 = vadd.xlane.f32.xlu1 %v619_v8  ;;  %v520_v8 = vmul.f32 %v3828_v27, %v3828_v27 }
  0xa9   :  { %v628_v43 = vadd.f32 %v515_v50, %v514_v49  ;;  %v3835_v49 = vld [vmem:[#allocation51_spill] sm:$0xff] }
  0xaa   :  { %617 = vadd.xlane.f32.xlu0 %v616_v23  ;;  %v518_v23 = vmul.f32 %v3830_v29, %v3830_v29  ;;  %v637_v41 = vadd.f32 %v521_v35, %v520_v8  ;;  %v523_v50 = vmul.f32 %v3835_v49, %v3835_v49  ;;  %v3837_v8 = vld [vmem:[#allocation53_spill] sm:$0xff] }
  0xab   :  { %v529_v35 = vmul.f32 %v3837_v8, %v3837_v8 }
  0xac   :  { %626 = vadd.xlane.f32.xlu1 %v625_v10  ;;  %v524_v10 = vmul.f32 %v3832_v46, %v3832_v46  ;;  %v634_v27 = vadd.f32 %v519_v34, %v518_v23  ;;  %v3839_v23 = vld [vmem:[#allocation55_spill] sm:$0xff] }
  0xad   :  { %v527_v34 = vmul.f32 %v3839_v23, %v3839_v23  ;;  %v3847_v23 = vld [vmem:[#allocation63_spill] sm:$0xff] }
  0xae   :  { %623 = vadd.xlane.f32.xlu0 %v622_v31  ;;  %v522_v31 = vmul.f32 %v3834_v52, %v3834_v52  ;;  %v643_v29 = vadd.f32 %v525_v21, %v524_v10  ;;  %v3841_v10 = vld [vmem:[#allocation57_spill] sm:$0xff] }
  0xaf   :  { %v533_v21 = vmul.f32 %v3841_v10, %v3841_v10 }
  0xb0   :  { %632 = vadd.xlane.f32.xlu1 %v631_v59  ;;  %v528_v59 = vmul.f32 %v3836_v14, %v3836_v14  ;;  %v640_v46 = vadd.f32 %v523_v50, %v522_v31  ;;  %v3843_v50 = vld [vmem:[#allocation59_spill] sm:$0xff] }
  0xb2   :  { %629 = vadd.xlane.f32.xlu0 %v628_v43  ;;  %v526_v43 = vmul.f32 %v3838_v3, %v3838_v3  ;;  %v649_v52 = vadd.f32 %v529_v35, %v528_v59  ;;  %v531_v3 = vmul.f32 %v3843_v50, %v3843_v50  ;;  %v3844_v59 = vld [vmem:[#allocation60_spill] sm:$0xff]  ;;  %v535_v50 = vmul.f32 %v3847_v23, %v3847_v23 }
  0xb3   :  { %v536_v35 = vmul.f32 %v3844_v59, %v3844_v59  ;;  %v3849_v59 = vld [vmem:[#allocation65_spill] sm:$0xff]  ;;  %v539_v23 = vmul.f32 %v3851_v15, %v3851_v15  ;;  %v543_v15 = vmul.f32 %v3855_v62, %v3855_v62  ;;  %v547_v62 = vmul.f32 %v3859_v57, %v3859_v57 }
  0xb4   :  { %638 = vadd.xlane.f32.xlu1 %v637_v41  ;;  %v532_v41 = vmul.f32 %v3840_v9, %v3840_v9  ;;  %v646_v8 = vadd.f32 %v527_v34, %v526_v43  ;;  %v3845_v9 = vld [vmem:[#allocation61_spill] sm:$0xff]  ;;  %v3846_v34 = vld [vmem:[#allocation62_spill] sm:$0xff]  ;;  %v551_v57 = vmul.f32 %v3863_v44, %v3863_v44  ;;  %v555_v44 = vmul.f32 %v3867_v37, %v3867_v37 }
  0xb5   :  { %v537_v10 = vmul.f32 %v3845_v9, %v3845_v9  ;;  %v541_v9 = vmul.f32 %v3849_v59, %v3849_v59  ;;  %v559_v37 = vmul.f32 %v3871_v25, %v3871_v25  ;;  %v563_v25 = vmul.f32 %v2067_v42, %v2067_v42 }
  0xb6   :  { %635 = vadd.xlane.f32.xlu0 %v634_v27  ;;  %v3842_v27 = vld [vmem:[#allocation58_spill] sm:$0xff]  ;;  %v567_v42 = vmul.f32 %v2079_v13, %v2079_v13  ;;  %v571_v13 = vmul.f32 %v2091_v51, %v2091_v51 }
  0xb7   :  { %v530_v31 = vmul.f32 %v3842_v27, %v3842_v27  ;;  %v534_v27 = vmul.f32 %v3846_v34, %v3846_v34 }
  0xb8   :  { %644 = vadd.xlane.f32.xlu1 %v643_v29  ;;  %v655_v29 = vadd.f32 %v533_v21, %v532_v41  ;;  %v3848_v41 = vld [vmem:[#allocation64_spill] sm:$0xff] }
  0xb9   :  { %v2205_v14 = vpop.xlane.xlu1 %341  ;;  %v652_v43 = vadd.f32 %v531_v3, %v530_v31  ;;  %v540_v21 = vmul.f32 %v3848_v41, %v3848_v41  ;;  %v658_v3 = vadd.f32 %v535_v50, %v534_v27  ;;  %v3850_v31 = vld [vmem:[#allocation66_spill] sm:$0xff]  ;;  %v3853_v41 = vld [vmem:[#allocation69_spill] sm:$0xff] }
  0xba   :  { %641 = vadd.xlane.f32.xlu0 %v640_v46  ;;  %v538_v34 = vmul.f32 %v3850_v31, %v3850_v31  ;;  %v545_v59 = vmul.f32 %v3853_v41, %v3853_v41  ;;  %v3854_v50 = vld [vmem:[#allocation70_spill] sm:$0xff] }
  0xbb   :  { %v2211_v49 = vpop.xlane.xlu0 %335  ;;  %v542_v31 = vmul.f32 %v3854_v50, %v3854_v50 }
  0xbc   :  { %650 = vadd.xlane.f32.xlu1 %v649_v52  ;;  %v661_v52 = vadd.f32 %v537_v10, %v536_v35  ;;  %v667_v10 = vadd.f32 %v541_v9, %v540_v21  ;;  %v664_v27 = vadd.f32 %v539_v23, %v538_v34  ;;  %v3858_v34 = vld [vmem:[#allocation74_spill] sm:$0xff] }
  0xbd   :  { %v2217_v46 = vpop.xlane.xlu1 %344  ;;  %v670_v23 = vadd.f32 %v543_v15, %v542_v31  ;;  %v546_v50 = vmul.f32 %v3858_v34, %v3858_v34  ;;  %v3862_v31 = vld [vmem:[#allocation78_spill] sm:$0xff] }
  0xbe   :  { %647 = vadd.xlane.f32.xlu0 %v646_v8  ;;  %v550_v34 = vmul.f32 %v3862_v31, %v3862_v31 }
  0xbf   :  { %v2223_v16 = vpop.xlane.xlu0 %338  ;;  %v676_v15 = vadd.f32 %v547_v62, %v546_v50  ;;  %v3866_v50 = vld [vmem:[#allocation82_spill] sm:$0xff] }
  0xc0   :  { %656 = vadd.xlane.f32.xlu1 %v655_v29  ;;  %v3852_v29 = vld [vmem:[#allocation68_spill] sm:$0xff]  ;;  %v682_v62 = vadd.f32 %v551_v57, %v550_v34  ;;  %v554_v31 = vmul.f32 %v3866_v50, %v3866_v50  ;;  %v3870_v34 = vld [vmem:[#allocation86_spill] sm:$0xff] }
  0xc1   :  { %v2229_v8 = vpop.xlane.xlu1 %350  ;;  %v544_v35 = vmul.f32 %v3852_v29, %v3852_v29  ;;  %v3857_v29 = vld [vmem:[#allocation73_spill] sm:$0xff]  ;;  %v558_v50 = vmul.f32 %v3870_v34, %v3870_v34 }
  0xc2   :  { %653 = vadd.xlane.f32.xlu0 %v652_v43  ;;  %v549_v41 = vmul.f32 %v3857_v29, %v3857_v29  ;;  %v688_v57 = vadd.f32 %v555_v44, %v554_v31  ;;  %v562_v31 = vmul.f32 %v2065_v55, %v2065_v55 }
  0xc3   :  { %v2235_v1 = vpop.xlane.xlu0 %347  ;;  %v673_v9 = vadd.f32 %v545_v59, %v544_v35  ;;  %v694_v44 = vadd.f32 %v559_v37, %v558_v50  ;;  %v566_v50 = vmul.f32 %v2077_v22, %v2077_v22 }
  0xc4   :  { %662 = vadd.xlane.f32.xlu1 %v661_v52  ;;  %v3856_v52 = vld [vmem:[#allocation72_spill] sm:$0xff]  ;;  %v700_v37 = vadd.f32 %v563_v25, %v562_v31  ;;  %v570_v31 = vmul.f32 %v2089_v60, %v2089_v60 }
  0xc5   :  { %v2241_v43 = vpop.xlane.xlu1 %356  ;;  %v548_v21 = vmul.f32 %v3856_v52, %v3856_v52  ;;  %v3861_v52 = vld [vmem:[#allocation77_spill] sm:$0xff]  ;;  %v706_v25 = vadd.f32 %v567_v42, %v566_v50  ;;  %v1056_v42 = vlaneseq }
  0xc6   :  { %659 = vadd.xlane.f32.xlu0 %v658_v3  ;;  %v553_v29 = vmul.f32 %v3861_v52, %v3861_v52 }
  0xc7   :  { %v2247_v58 = vpop.xlane.xlu0 %353  ;;  %v679_v59 = vadd.f32 %v549_v41, %v548_v21  ;;  %v1057_v51 = vshrl.u32 %v1056_v42, 7  ;;  %v2362_v42 = vmul.f32 0.00390625, %v2217_v46  ;;  %v2380_v46 = vmul.f32 0.00390625, %v2229_v8 }
  0xc8   :  { %668 = vadd.xlane.f32.xlu1 %v667_v10  ;;  %v3860_v10 = vld [vmem:[#allocation76_spill] sm:$0xff] }
  0xc9   :  { %v2253_v3 = vpop.xlane.xlu1 %362  ;;  %v552_v35 = vmul.f32 %v3860_v10, %v3860_v10  ;;  %v3865_v10 = vld [vmem:[#allocation81_spill] sm:$0xff]  ;;  %v2443_v7 = vmul.f32 %v2380_v46, %v2380_v46 }
  0xca   :  { %665 = vadd.xlane.f32.xlu0 %v664_v27  ;;  %v557_v52 = vmul.f32 %v3865_v10, %v3865_v10 }
  0xcb   :  { %v2259_v45 = vpop.xlane.xlu0 %359  ;;  %v685_v41 = vadd.f32 %v553_v29, %v552_v35 }
  0xcc   :  { %674 = vadd.xlane.f32.xlu1 %v673_v9  ;;  %v3864_v9 = vld [vmem:[#allocation80_spill] sm:$0xff] }
  0xcd   :  { %v2265_v27 = vpop.xlane.xlu1 %368  ;;  %v556_v21 = vmul.f32 %v3864_v9, %v3864_v9  ;;  %v3869_v9 = vld [vmem:[#allocation85_spill] sm:$0xff] }
  0xce   :  { %671 = vadd.xlane.f32.xlu0 %v670_v23  ;;  %v561_v10 = vmul.f32 %v3869_v9, %v3869_v9  ;;  %v2450_v32 = vmul.f32 0.00390625, %v2265_v27 }
  0xcf   :  { %v2271_v40 = vpop.xlane.xlu0 %365  ;;  %v691_v29 = vadd.f32 %v557_v52, %v556_v21  ;;  %v3872_v21 = vld [vmem:[#allocation89_spill] sm:$0xff] }
  0xd0   :  { %680 = vadd.xlane.f32.xlu1 %v679_v59  ;;  %v3868_v59 = vld [vmem:[#allocation84_spill] sm:$0xff]  ;;  %v565_v9 = vmul.f32 %v3872_v21, %v3872_v21  ;;  %3879 = vst [vmem:[#allocation106_spill] sm:$0xff] %v2450_v32  ;;  %v2461_v39 = vmul.f32 0.00390625, %v2271_v40  ;;  %v2515_v63 = vmul.f32 %v2450_v32, %v2450_v32 }
  0xd1   :  { %v2277_v23 = vpop.xlane.xlu1 %374  ;;  %v560_v35 = vmul.f32 %v3868_v59, %v3868_v59 }
  0xd2   :  { %677 = vadd.xlane.f32.xlu0 %v676_v15  ;;  %3880 = vst [vmem:[#allocation107_spill] sm:$0xff] %v2461_v39 }
  0xd3   :  { %v2283_v26 = vpop.xlane.xlu0 %371  ;;  %v697_v52 = vadd.f32 %v561_v10, %v560_v35  ;;  %v569_v35 = vmul.f32 %v2073_v61, %v2073_v61 }
  0xd4   :  { %686 = vadd.xlane.f32.xlu1 %v685_v41  ;;  %v564_v41 = vmul.f32 %v2059_v56, %v2059_v56  ;;  %v2487_v27 = vmul.f32 0.00390625, %v2283_v26 }
  0xd5   :  { %v2289_v15 = vpop.xlane.xlu1 %380 }
  0xd6   :  { %683 = vadd.xlane.f32.xlu0 %v682_v62  ;;  %v703_v10 = vadd.f32 %v565_v9, %v564_v41  ;;  %v573_v41 = vmul.f32 %v2085_v36, %v2085_v36  ;;  %3882 = vst [vmem:[#allocation109_spill] sm:$0xff] %v2487_v27  ;;  %v2550_v6 = vmul.f32 %v2487_v27, %v2487_v27 }
  0xd7   :  { %v2295_v20 = vpop.xlane.xlu0 %377 }
  0xd8   :  { %692 = vadd.xlane.f32.xlu1 %v691_v29  ;;  %v568_v29 = vmul.f32 %v2071_v30, %v2071_v30 }
  0xd9   :  { %v2301_v62 = vpop.xlane.xlu1 %386 }
  0xda   :  { %689 = vadd.xlane.f32.xlu0 %v688_v57  ;;  %v709_v9 = vadd.f32 %v569_v35, %v568_v29  ;;  %v712_v35 = vadd.f32 %v571_v13, %v570_v31  ;;  %v2348_v13 = vmul.f32 0.00390625, %v2205_v14  ;;  %v1054_v31 = vld [vmem:[%s3490_s2] sm:$0x3]  ;;  %v2522_v54 = vmul.f32 0.00390625, %v2301_v62  ;;  %s1753_s2 = smov [#allocation7]  }
  0xdb   :  { %v2307_v34 = vpop.xlane.xlu0 %383 }
  0xdc   :  { %698 = vadd.xlane.f32.xlu1 %v697_v52  ;;  %v572_v52 = vmul.f32 %v2083_v2, %v2083_v2  ;;  %3873 = vst [vmem:[#allocation100_spill] sm:$0xff] %v2348_v13  ;;  %v2395_v56 = vmul.f32 %v2348_v13, %v2348_v13  ;;  %3890 = vst [vmem:[#allocation112_spill] sm:$0xff] %v2522_v54  ;;  %v2535_v0 = vmul.f32 0.00390625, %v2307_v34 }
  0xdd   :  { %v2313_v57 = vpop.xlane.xlu1 %392  ;;  %v2587_v27 = vmul.f32 %v2522_v54, %v2522_v54 }
  0xde   :  { %695 = vadd.xlane.f32.xlu0 %v694_v44  ;;  %3893 = vst [vmem:[#allocation113_spill] sm:$0xff] %v2535_v0  ;;  %v2546_v47 = vmul.f32 0.00390625, %v2313_v57  ;;  %v2598_v32 = vmul.f32 %v2535_v0, %v2535_v0 }
  0xdf   :  { %v2319_v55 = vpop.xlane.xlu0 %389 }
  0xe0   :  { %704 = vadd.xlane.f32.xlu1 %v703_v10  ;;  %v715_v10 = vadd.f32 %v573_v41, %v572_v52  ;;  %v1058_v52 = vsub.s32 0, %v1057_v51  ;;  %v1062_v41 = vsub.s32 1, %v1057_v51  ;;  %v2365_v51 = vmul.f32 0.00390625, %v2223_v16  ;;  %3896 = vst [vmem:[#allocation114_spill] sm:$0xff] %v2546_v47 }
  0xe1   :  { %v2325_v44 = vpop.xlane.xlu1 %398 }
  0xe2   :  { %701 = vadd.xlane.f32.xlu0 %v700_v37  ;;  %v2369_v61 = vrot.slane %v1054_v31, %v1058_v52  ;;  %v2371_v30 = vrot.slane %v1054_v31, %v1062_v41  ;;  %v2391_v31 = vmul.f32 0.00390625, %v2235_v1  ;;  %v2426_v1 = vmul.f32 0.00390625, %v2253_v3 }
  0xe3   :  { %v2331_v22 = vpop.xlane.xlu0 %395 }
  0xe4   :  { %710 = vadd.xlane.f32.xlu1 %v709_v9  ;;  %3874 = vst [vmem:[#allocation101_spill] sm:$0xff] %v2369_v61  ;;  %v2413_v61 = vmul.f32 0.00390625, %v2247_v58  ;;  %3877 = vst [vmem:[#allocation104_spill] sm:$0xff] %v2426_v1  ;;  %v2432_v58 = vmul.f32 %v2365_v51, %v2365_v51  ;;  %v2491_v48 = vmul.f32 %v2426_v1, %v2426_v1  ;;  %v2509_v1 = vmul.f32 0.00390625, %v2295_v20 }
  0xe5   :  { %v2333_v29 = vpop.xlane.xlu1 %404  ;;  %v2528_v20 = vmul.f32 %v2461_v39, %v2461_v39 }
  0xe6   :  { %707 = vadd.xlane.f32.xlu0 %v706_v25  ;;  %3876 = vst [vmem:[#allocation103_spill] sm:$0xff] %v2413_v61  ;;  %v2480_v40 = vmul.f32 %v2413_v61, %v2413_v61  ;;  %v2498_v61 = vmul.f32 0.00390625, %v2289_v15  ;;  %3887 = vst [vmem:[#allocation111_spill] sm:$0xff] %v2509_v1  ;;  %v2583_v15 = vmul.f32 0.00390625, %v2331_v22 }
  0xe7   :  { %v2335_v2 = vpop.xlane.xlu0 %401 }
  0xe8   :  { %716 = vadd.xlane.f32.xlu1 %v715_v10  ;;  %v1354_v10 = vld [vmem:[%s3491_s3] sm:$0x3]  ;;  %3884 = vst [vmem:[#allocation110_spill] sm:$0xff] %v2498_v61  ;;  %v2563_v39 = vmul.f32 %v2498_v61, %v2498_v61  ;;  %3907 = vst [vmem:[#allocation119_spill] sm:$0xff] %v2583_v15  ;;  %v2605_v54 = vmul.f32 0.00390625, %v2335_v2  ;;  %v2646_v61 = vmul.f32 %v2583_v15, %v2583_v15  ;;  %s1563_s3 = sshll.u32 %s1753_s2, 4  ;;  %s1564_s3 = int_to_ptr.vmem [resolvable:$true] %s1563_s3 }
  0xe9   :  { %v2337_v37 = vpop.xlane.xlu1 %410  ;;  %v2373_v21 = vrot.slane %v1354_v10, %v1058_v52  ;;  %v2384_v16 = vrot.slane %v1354_v10, %v1062_v41  ;;  %v2402_v10 = vmul.f32 0.00390625, %v2241_v43  ;;  %v2419_v41 = vmul.f32 %v2362_v42, %v2362_v42  ;;  %s1721_s17 = scalar_lea.vmem %s1564_s3, 12288  ;;  %p1726_p3 = scmp.lt.s32.totalorder %s1564_s3, %s1564_s3 }
  0xea   :  { %713 = vadd.xlane.f32.xlu0 %v712_v35  ;;  %v2359_v35 = vmul.f32 0.00390625, %v2211_v49  ;;  %v2439_v43 = vmul.f32 0.00390625, %v2259_v45  ;;  %v2454_v52 = vmul.f32 %v2391_v31, %v2391_v31  ;;  %v2474_v45 = vmul.f32 0.00390625, %v2277_v23  ;;  %3900 = vst [vmem:[#allocation116_spill] sm:$0xff] %v2563_v39  ;;  %3913 = vst [vmem:[#allocation121_spill] sm:$0xff] %v2605_v54  ;;  %p1722_p2 = scmp.ne.s32.totalorder %s1564_s3, %s1721_s17  ;;  %p1727_p4 = scmp.lt.s32.totalorder %s1721_s17, %s1721_s17 }
  0xeb   :  { %v2339_v50 = vpop.xlane.xlu0 %407  ;;  %3875 = vst [vmem:[#allocation102_spill] sm:$0xff] %v2402_v10  ;;  %v2467_v33 = vmul.f32 %v2402_v10, %v2402_v10  ;;  %v2570_v10 = vmul.f32 0.00390625, %v2325_v44  ;;  %v2618_v39 = vmul.f32 0.00390625, %v2337_v37 }
  0xec   :  { %v2406_v49 = vmul.f32 %v2359_v35, %v2359_v35  ;;  %3878 = vst [vmem:[#allocation105_spill] sm:$0xff] %v2439_v43  ;;  %3881 = vst [vmem:[#allocation108_spill] sm:$0xff] %v2474_v45  ;;  %v2502_v4 = vmul.f32 %v2439_v43, %v2439_v43  ;;  %v2539_v43 = vmul.f32 %v2474_v45, %v2474_v45  ;;  %v2557_v45 = vmul.f32 0.00390625, %v2319_v55  ;;  %p1728_p5 = por %p1727_p4, %p1726_p3 }
  0xed   :  { %v2341_v60 = vpop.xlane.xlu1 %416  ;;  %3903 = vst [vmem:[#allocation117_spill] sm:$0xff] %v2570_v10  ;;  %v2576_v55 = vmul.f32 %v2509_v1, %v2509_v1  ;;  %v2611_v1 = vmul.f32 %v2546_v47, %v2546_v47  ;;  %3917 = vst [vmem:[#allocation123_spill] sm:$0xff] %v2618_v39  ;;  %v2631_v57 = vmul.f32 0.00390625, %v2339_v50  ;;  %v2635_v0 = vmul.f32 %v2570_v10, %v2570_v10 }
  0xee   :  { %3899 = vst [vmem:[#allocation115_spill] sm:$0xff] %v2557_v45  ;;  %v2624_v2 = vmul.f32 %v2557_v45, %v2557_v45  ;;  %v2683_v15 = vmul.f32 %v2618_v39, %v2618_v39  ;;  %p1729_p6 = pnand %p1728_p5, %p1722_p2 }
  0xef   :  { %v2343_v36 = vpop.xlane.xlu0 %413  ;;  %3904 = vst [vmem:[#allocation118_spill] sm:$0xff] %v2576_v55  ;;  %v2594_v55 = vmul.f32 0.00390625, %v2333_v29  ;;  %3914 = vst [vmem:[#allocation122_spill] sm:$0xff] %v2611_v1  ;;  %v2694_v47 = vmul.f32 %v2631_v57, %v2631_v57 }
  0xf0   :  { %3918 = vst [vmem:[#allocation124_spill] sm:$0xff] %v2624_v2  ;;  %3921 = vst [vmem:[#allocation125_spill] sm:$0xff] %v2631_v57  ;;  %v2642_v2 = vmul.f32 0.00390625, %v2341_v60  ;;  %v2653_v10 = vmul.f32 0.00390625, %v2343_v36  ;;  %v2672_v36 = vmul.f32 %v2605_v54, %v2605_v54 }
  0xf1   :  { %v2345_v9 = vpop.xlane.xlu1 %422  ;;  %3910 = vst [vmem:[#allocation120_spill] sm:$0xff] %v2594_v55  ;;  %v2659_v45 = vmul.f32 %v2594_v55, %v2594_v55 }
  0xf2   :  { %3924 = vst [vmem:[#allocation126_spill] sm:$0xff] %v2642_v2  ;;  %3927 = vst [vmem:[#allocation127_spill] sm:$0xff] %v2653_v10  ;;  %v2666_v1 = vmul.f32 0.00390625, %v2345_v9  ;;  %v2707_v54 = vmul.f32 %v2642_v2, %v2642_v2 }
  0xf3   :  { %v2350_v25 = vpop.xlane.xlu0 %419  ;;  %3928 = vst [vmem:[#allocation128_spill] sm:$0xff] %v2659_v45  ;;  %3932 = vst [vmem:[#allocation130_spill] sm:$0xff] %v2672_v36 }
  0xf4   :  { %3931 = vst [vmem:[#allocation129_spill] sm:$0xff] %v2666_v1  ;;  %v2679_v29 = vmul.f32 0.00390625, %v2350_v25  ;;  %3942 = vst [vmem:[#allocation134_spill] sm:$0xff] %v2707_v54  ;;  %v2731_v57 = vmul.f32 %v2666_v1, %v2666_v1 }
  0xf5   :  { %v2367_v14 = vpop.xlane.xlu1 %428 }
  0xf6   :  { %3935 = vst [vmem:[#allocation131_spill] sm:$0xff] %v2679_v29  ;;  %v2690_v36 = vmul.f32 0.00390625, %v2367_v14  ;;  %v2742_v55 = vmul.f32 %v2679_v29, %v2679_v29 }
  0xf7   :  { %v2382_v59 = vpop.xlane.xlu0 %425 }
  0xf8   :  { %3938 = vst [vmem:[#allocation132_spill] sm:$0xff] %v2690_v36  ;;  %v2701_v39 = vmul.f32 0.00390625, %v2382_v59  ;;  %v2720_v59 = vmul.f32 %v2653_v10, %v2653_v10  ;;  %v2755_v10 = vmul.f32 %v2690_v36, %v2690_v36 }
  0xf9   :  { %v2415_v8 = vpop.xlane.xlu1 %434 }
  0xfa   :  { %3941 = vst [vmem:[#allocation133_spill] sm:$0xff] %v2701_v39  ;;  %v2714_v45 = vmul.f32 0.00390625, %v2415_v8  ;;  %3946 = vst [vmem:[#allocation136_spill] sm:$0xff] %v2720_v59 }
  0xfb   :  { %v2428_v13 = vpop.xlane.xlu0 %431  ;;  %3956 = vst [vmem:[#allocation140_spill] sm:$0xff] %v2755_v10 }
  0xfc   :  { %3945 = vst [vmem:[#allocation135_spill] sm:$0xff] %v2714_v45  ;;  %v2727_v60 = vmul.f32 0.00390625, %v2428_v13  ;;  %v2779_v29 = vmul.f32 %v2714_v45, %v2714_v45 }
  0xfd   :  { %v2463_v3 = vpop.xlane.xlu1 %440 }
  0xfe   :  { %3949 = vst [vmem:[#allocation137_spill] sm:$0xff] %v2727_v60  ;;  %v2738_v59 = vmul.f32 0.00390625, %v2463_v3  ;;  %v2790_v2 = vmul.f32 %v2727_v60, %v2727_v60 }
  0xff   :  { %v2476_v53 = vpop.xlane.xlu0 %437 }
 0x100   :  { %3952 = vst [vmem:[#allocation138_spill] sm:$0xff] %v2738_v59  ;;  %v2749_v1 = vmul.f32 0.00390625, %v2476_v53  ;;  %v2768_v53 = vmul.f32 %v2701_v39, %v2701_v39  ;;  %3967 = vst [vmem:[#allocation145_spill] sm:$0xff] %v2790_v2  ;;  %v2798_v8 = vmul.f32 %v2738_v59, %v2738_v59 }
 0x101   :  { %v2511_v23 = vpop.xlane.xlu1 %446 }
 0x102   :  { %3955 = vst [vmem:[#allocation139_spill] sm:$0xff] %v2749_v1  ;;  %v2762_v54 = vmul.f32 0.00390625, %v2511_v23  ;;  %3960 = vst [vmem:[#allocation142_spill] sm:$0xff] %v2768_v53  ;;  %v2802_v39 = vmul.f32 %v2749_v1, %v2749_v1 }
 0x103   :  { %v2524_v26 = vpop.xlane.xlu0 %443  ;;  %3970 = vst [vmem:[#allocation146_spill] sm:$0xff] %v2798_v8 }
 0x104   :  { %3959 = vst [vmem:[#allocation141_spill] sm:$0xff] %v2762_v54  ;;  %v2775_v14 = vmul.f32 0.00390625, %v2524_v26  ;;  %v2818_v1 = vmul.f32 %v2762_v54, %v2762_v54 }
 0x105   :  { %v2559_v19 = vpop.xlane.xlu1 %452 }
 0x106   :  { %3963 = vst [vmem:[#allocation143_spill] sm:$0xff] %v2775_v14  ;;  %v2786_v53 = vmul.f32 0.00390625, %v2559_v19  ;;  %3976 = vst [vmem:[#allocation149_spill] sm:$0xff] %v2818_v1  ;;  %v2827_v23 = vmul.f32 %v2775_v14, %v2775_v14 }
 0x107   :  { %v2572_v34 = vpop.xlane.xlu0 %449 }
 0x108   :  { %3966 = vst [vmem:[#allocation144_spill] sm:$0xff] %v2786_v53  ;;  %v2809_v10 = vmul.f32 0.00390625, %v2572_v34  ;;  %3979 = vst [vmem:[#allocation150_spill] sm:$0xff] %v2827_v23  ;;  %v2837_v19 = vmul.f32 %v2786_v53, %v2786_v53 }
 0x109   :  { %v2607_v62 = vpop.xlane.xlu1 %458 }
 0x10a   :  { %3973 = vst [vmem:[#allocation147_spill] sm:$0xff] %v2809_v10  ;;  %v2814_v59 = vmul.f32 0.00390625, %v2607_v62 }
 0x10b   :  { %v2620_v22 = vpop.xlane.xlu0 %455 }
 0x10c   :  { %3975 = vst [vmem:[#allocation148_spill] sm:$0xff] %v2814_v59 }
 0x10d   :  { %v2655_v44 = vpop.xlane.xlu1 %464 }
 0x10f   :  { %v2668_v50 = vpop.xlane.xlu0 %461 }
 0x110   :  { %v2871_v60 = vmul.f32 0.00390625, %v2668_v50 }
 0x111   :  { %v2703_v37 = vpop.xlane.xlu1 %470 }
 0x112   :  { %v2882_v2 = vmul.f32 0.00390625, %v2703_v37 }
 0x113   :  { %v2716_v25 = vpop.xlane.xlu0 %467 }
 0x115   :  { %v2751_v9 = vpop.xlane.xlu1 %476 }
 0x117   :  { %v2764_v13 = vpop.xlane.xlu0 %473 }
 0x119   :  { %v579_v45 = vpop.xlane.xlu1 %578 }
 0x11a   :  { %v767_v26 = vmul.f32 0.00390625, %v579_v45 }
 0x11b   :  { %v576_v5 = vpop.xlane.xlu0 %575 }
 0x11c   :  { %v766_v8 = vmul.f32 0.00390625, %v576_v5  ;;  %v863_v45 = vsub.f32 %v767_v26, %v2432_v58  ;;  %v2832_v5 = vmul.f32 0.00390625, %v2620_v22  ;;  %v2852_v58 = vmul.f32 0.00390625, %v2655_v44 }
 0x11d   :  { %v585_v54 = vpop.xlane.xlu1 %584  ;;  %v2860_v22 = vmul.f32 %v2814_v59, %v2814_v59  ;;  %v3997_v59 = vsub.f32 %v1829_v28, %v2365_v51 }
 0x11e   :  { %3981 = vst [vmem:[#allocation151_spill] sm:$0xff] %v2832_v5  ;;  %v862_v36 = vsub.f32 %v766_v8, %v2406_v49  ;;  %v911_v3 = vmax.f32 %v863_v45, 0.0  ;;  %v769_v14 = vmul.f32 0.00390625, %v585_v54  ;;  %v2847_v49 = vmul.f32 %v2809_v10, %v2809_v10  ;;  %3986 = vst [vmem:[#allocation152_spill] sm:$0xff] %v2852_v58 }
 0x11f   :  { %v582_v23 = vpop.xlane.xlu0 %581 }
 0x120   :  { %v910_v62 = vmax.f32 %v862_v36, 0.0  ;;  %v768_v1 = vmul.f32 0.00390625, %v582_v23  ;;  %v959_v34 = vadd.f32 1e-12, %v911_v3  ;;  %v865_v45 = vsub.f32 %v769_v14, %v2419_v41 }
 0x121   :  { %v591_v23 = vpop.xlane.xlu1 %590 }
 0x122   :  { %v958_v26 = vadd.f32 1e-12, %v910_v62  ;;  %v864_v36 = vsub.f32 %v768_v1, %v2395_v56  ;;  %1581 = vrsqrt.f32 %v959_v34  ;;  %v913_v44 = vmax.f32 %v865_v45, 0.0 }
 0x123   :  { %v771_v8 = vmul.f32 0.00390625, %v591_v23  ;;  %v588_v3 = vpop.xlane.xlu0 %587  ;;  %v2866_v62 = vmul.f32 %v2832_v5, %v2832_v5 }
 0x124   :  { %1583 = vrsqrt.f32 %v958_v26  ;;  %v912_v41 = vmax.f32 %v864_v36, 0.0  ;;  %v770_v14 = vmul.f32 0.00390625, %v588_v3  ;;  %v961_v54 = vadd.f32 1e-12, %v913_v44 }
 0x125   :  { %v867_v53 = vsub.f32 %v771_v8, %v2443_v7  ;;  %v597_v36 = vpop.xlane.xlu1 %596  ;;  %v2879_v3 = vmul.f32 %v2852_v58, %v2852_v58  ;;  %v2885_v7 = vmul.f32 0.00390625, %v2716_v25 }
 0x126   :  { %v960_v23 = vadd.f32 1e-12, %v912_v41  ;;  %v866_v26 = vsub.f32 %v770_v14, %v2454_v52  ;;  %1585 = vrsqrt.f32 %v961_v54  ;;  %v773_v1 = vmul.f32 0.00390625, %v597_v36 }
 0x127   :  { %v915_v50 = vmax.f32 %v867_v53, 0.0  ;;  %v594_v44 = vpop.xlane.xlu0 %593  ;;  %3991 = vst [vmem:[#allocation153_spill] sm:$0xff] %v2885_v7  ;;  %v2888_v52 = vmul.f32 0.00390625, %v2751_v9  ;;  %v2891_v14 = vmul.f32 0.00390625, %v2764_v13  ;;  %v2903_v13 = vmul.f32 %v2882_v2, %v2882_v2 }
 0x128   :  { %1587 = vrsqrt.f32 %v960_v23  ;;  %v914_v8 = vmax.f32 %v866_v26, 0.0  ;;  %v772_v41 = vmul.f32 0.00390625, %v594_v44  ;;  %v869_v37 = vsub.f32 %v773_v1, %v2467_v33 }
 0x129   :  { %3992 = vst [vmem:[#allocation154_spill] sm:$0xff] %v2888_v52  ;;  %3993 = vst [vmem:[#allocation155_spill] sm:$0xff] %v2891_v14  ;;  %v963_v45 = vadd.f32 1e-12, %v915_v50  ;;  %v603_v25 = vpop.xlane.xlu1 %602  ;;  %v2899_v23 = vmul.f32 %v2871_v60, %v2871_v60  ;;  %v2907_v50 = vmul.f32 %v2885_v7, %v2885_v7 }
 0x12a   :  { %v962_v36 = vadd.f32 1e-12, %v914_v8  ;;  %v868_v34 = vsub.f32 %v772_v41, %v2480_v40  ;;  %v917_v9 = vmax.f32 %v869_v37, 0.0  ;;  %v775_v26 = vmul.f32 0.00390625, %v603_v25 }
 0x12b   :  { %1589 = vrsqrt.f32 %v963_v45  ;;  %v600_v44 = vpop.xlane.xlu0 %599  ;;  %v2912_v45 = vmul.f32 %v2888_v52, %v2888_v52  ;;  %v2916_v37 = vmul.f32 %v2891_v14, %v2891_v14  ;;  %v3996_v14 = vsub.f32 %v1825_v24, %v2365_v51 }
 0x12c   :  { %1591 = vrsqrt.f32 %v962_v36  ;;  %v916_v33 = vmax.f32 %v868_v34, 0.0  ;;  %v774_v1 = vmul.f32 0.00390625, %v600_v44  ;;  %v1582_v40 = vpop.eup %1581  ;;  %v965_v8 = vadd.f32 1e-12, %v917_v9  ;;  %v3995_v36 = vld [vmem:[#allocation101_spill] sm:$0xff] }
 0x12d   :  { %v871_v41 = vsub.f32 %v775_v26, %v2491_v48  ;;  %v1068_v34 = vmul.f32 %v1582_v40, %v3995_v36  ;;  %v1069_v44 = vmul.f32 %v1582_v40, %v2371_v30  ;;  %v609_v58 = vpop.xlane.xlu1 %608 }
 0x12e   :  { %v1584_v25 = vpop.eup %1583  ;;  %v964_v53 = vadd.f32 1e-12, %v916_v33  ;;  %v870_v54 = vsub.f32 %v774_v1, %v2502_v4  ;;  %1593 = vrsqrt.f32 %v965_v8  ;;  %v3998_v4 = vsub.f32 %v1813_v11, %v2359_v35 }
 0x12f   :  { %v1066_v9 = vmul.f32 %v1584_v25, %v3995_v36  ;;  %v1067_v48 = vmul.f32 %v1584_v25, %v2371_v30  ;;  %v919_v26 = vmax.f32 %v871_v41, 0.0  ;;  %v606_v56 = vpop.xlane.xlu0 %605  ;;  %v1260_v5 = vmul.f32 %v3996_v14, %v1068_v34 }
 0x130   :  { %v1261_v10 = vmul.f32 %v3997_v59, %v1069_v44  ;;  %1595 = vrsqrt.f32 %v964_v53  ;;  %v918_v33 = vmax.f32 %v870_v54, 0.0  ;;  %v1586_v40 = vpop.eup %1585  ;;  %v3999_v8 = vsub.f32 %v1815_v12, %v2359_v35 }
 0x131   :  { %v1258_v1 = vmul.f32 %v3998_v4, %v1066_v9  ;;  %v967_v25 = vadd.f32 1e-12, %v919_v26  ;;  %v777_v52 = vmul.f32 0.00390625, %v609_v58  ;;  %v1368_v24 = vadd.f32 %v2373_v21, %v1260_v5  ;;  %v615_v59 = vpop.xlane.xlu1 %614  ;;  %v4003_v26 = vld [vmem:[#allocation100_spill] sm:$0xff] }
 0x132   :  { %v1259_v41 = vmul.f32 %v3999_v8, %v1067_v48  ;;  %v1588_v7 = vpop.eup %1587  ;;  %v1369_v14 = vadd.f32 %v2384_v16, %v1261_v10  ;;  %v1072_v28 = vmul.f32 %v1586_v40, %v3995_v36  ;;  %v1073_v51 = vmul.f32 %v1586_v40, %v2371_v30  ;;  %v4002_v48 = vld [vmem:[#allocation11_spill] sm:$0xff]  ;;  %v4005_v4 = vld [vmem:[#allocation12_spill] sm:$0xff] }
 0x133   :  { %v1366_v54 = vadd.f32 %v2373_v21, %v1258_v1  ;;  %v1070_v53 = vmul.f32 %v1588_v7, %v3995_v36  ;;  %v1071_v12 = vmul.f32 %v1588_v7, %v2371_v30  ;;  %v612_v35 = vpop.xlane.xlu0 %611  ;;  %1464 = vst [vmem:[#allocation7 + $0x10] sm:$0xff] %v1368_v24  ;;  %v4000_v5 = vsub.f32 %v1819_v17, %v2362_v42 }
 0x134   :  { %v1367_v11 = vadd.f32 %v2384_v16, %v1259_v41  ;;  %1465 = vst [vmem:[#allocation7 + $0x18] sm:$0xff] %v1369_v14  ;;  %v4001_v58 = vsub.f32 %v1821_v18, %v2362_v42  ;;  %1597 = vrsqrt.f32 %v967_v25  ;;  %v966_v44 = vadd.f32 1e-12, %v918_v33 }
 0x135   :  { %v1264_v10 = vmul.f32 %v4000_v5, %v1072_v28  ;;  %v1590_v9 = vpop.eup %1589  ;;  %1462 = vst [vmem:[#allocation7] sm:$0xff] %v1366_v54  ;;  %v4004_v40 = vsub.f32 %v4002_v48, %v4003_v26  ;;  %v4006_v1 = vsub.f32 %v4005_v4, %v4003_v26  ;;  %v873_v17 = vsub.f32 %v777_v52, %v2515_v63  ;;  %v621_v14 = vpop.xlane.xlu1 %620  ;;  %v4012_v26 = vld [vmem:[#allocation15_spill] sm:$0xff] }
 0x136   :  { %v1265_v34 = vmul.f32 %v4001_v58, %v1073_v51  ;;  %1463 = vst [vmem:[#allocation7 + $0x8] sm:$0xff] %v1367_v11  ;;  %v776_v41 = vmul.f32 0.00390625, %v606_v56  ;;  %v1592_v24 = vpop.eup %1591  ;;  %v1076_v33 = vmul.f32 %v1590_v9, %v3995_v36  ;;  %v1077_v25 = vmul.f32 %v1590_v9, %v2371_v30  ;;  %v4007_v56 = vld [vmem:[#allocation13_spill] sm:$0xff] }
 0x137   :  { %v1262_v7 = vmul.f32 %v4004_v40, %v1070_v53  ;;  %v1263_v8 = vmul.f32 %v4006_v1, %v1071_v12  ;;  %v1372_v18 = vadd.f32 %v2373_v21, %v1264_v10  ;;  %v1074_v54 = vmul.f32 %v1592_v24, %v3995_v36  ;;  %v618_v63 = vpop.xlane.xlu0 %617  ;;  %v4009_v12 = vld [vmem:[#allocation14_spill] sm:$0xff] }
 0x138   :  { %v1373_v42 = vadd.f32 %v2384_v16, %v1265_v34  ;;  %v1075_v11 = vmul.f32 %v1592_v24, %v2371_v30  ;;  %v4008_v52 = vsub.f32 %v4007_v56, %v2380_v46  ;;  %v4010_v5 = vsub.f32 %v4009_v12, %v2380_v46  ;;  %v1594_v34 = vpop.eup %1593  ;;  %v4020_v12 = vld [vmem:[#allocation103_spill] sm:$0xff] }
 0x139   :  { %v1370_v28 = vadd.f32 %v2373_v21, %v1262_v7  ;;  %v1371_v51 = vadd.f32 %v2384_v16, %v1263_v8  ;;  %1468 = vst [vmem:[#allocation7 + $0x30] sm:$0xff] %v1372_v18  ;;  %1599 = vrsqrt.f32 %v966_v44  ;;  %v921_v58 = vmax.f32 %v873_v17, 0.0  ;;  %v627_v18 = vpop.xlane.xlu1 %626 }
 0x13a   :  { %1469 = vst [vmem:[#allocation7 + $0x38] sm:$0xff] %v1373_v42  ;;  %v1268_v53 = vmul.f32 %v4008_v52, %v1076_v33  ;;  %v1269_v10 = vmul.f32 %v4010_v5, %v1077_v25  ;;  %v4011_v9 = vsub.f32 %v1837_v38, %v2391_v31  ;;  %v4013_v40 = vsub.f32 %v4012_v26, %v2391_v31  ;;  %v1596_v8 = vpop.eup %1595 }
 0x13b   :  { %1466 = vst [vmem:[#allocation7 + $0x20] sm:$0xff] %v1370_v28  ;;  %1467 = vst [vmem:[#allocation7 + $0x28] sm:$0xff] %v1371_v51  ;;  %v872_v4 = vsub.f32 %v776_v41, %v2528_v20  ;;  %v779_v1 = vmul.f32 0.00390625, %v615_v59  ;;  %v1080_v17 = vmul.f32 %v1594_v34, %v3995_v36  ;;  %v1081_v24 = vmul.f32 %v1594_v34, %v2371_v30  ;;  %v624_v20 = vpop.xlane.xlu0 %623  ;;  %v4014_v59 = vld [vmem:[#allocation16_spill] sm:$0xff]  ;;  %v4015_v41 = vld [vmem:[#allocation102_spill] sm:$0xff] }
 0x13c   :  { %v1266_v48 = vmul.f32 %v4011_v9, %v1074_v54  ;;  %v1267_v7 = vmul.f32 %v4013_v40, %v1075_v11  ;;  %v1376_v46 = vadd.f32 %v2373_v21, %v1268_v53  ;;  %v1377_v44 = vadd.f32 %v2384_v16, %v1269_v10  ;;  %v4017_v51 = vld [vmem:[#allocation17_spill] sm:$0xff]  ;;  %v4019_v53 = vld [vmem:[#allocation18_spill] sm:$0xff]  ;;  %v4022_v34 = vld [vmem:[#allocation19_spill] sm:$0xff] }
 0x13d   :  { %v1078_v31 = vmul.f32 %v1596_v8, %v3995_v36  ;;  %v1079_v33 = vmul.f32 %v1596_v8, %v2371_v30  ;;  %v4016_v25 = vsub.f32 %v4014_v59, %v4015_v41  ;;  %v4018_v54 = vsub.f32 %v4017_v51, %v4015_v41 }
 0x13e   :  { %v1374_v38 = vadd.f32 %v2373_v21, %v1266_v48  ;;  %v1375_v42 = vadd.f32 %v2384_v16, %v1267_v7  ;;  %1472 = vst [vmem:[#allocation7 + $0x50] sm:$0xff] %v1376_v46  ;;  %1473 = vst [vmem:[#allocation7 + $0x58] sm:$0xff] %v1377_v44  ;;  %v969_v56 = vadd.f32 1e-12, %v921_v58  ;;  %v920_v52 = vmax.f32 %v872_v4, 0.0  ;;  %v1598_v7 = vpop.eup %1597  ;;  %v633_v4 = vpop.xlane.xlu1 %632 }
 0x13f   :  { %v1272_v28 = vmul.f32 %v4016_v25, %v1080_v17  ;;  %v1273_v11 = vmul.f32 %v4018_v54, %v1081_v24  ;;  %v4021_v5 = vsub.f32 %v4019_v53, %v4020_v12  ;;  %v4023_v9 = vsub.f32 %v4022_v34, %v4020_v12  ;;  %v4027_v25 = vld [vmem:[#allocation21_spill] sm:$0xff]  ;;  %v4029_v12 = vld [vmem:[#allocation116_spill] sm:$0xff] }
 0x140   :  { %1470 = vst [vmem:[#allocation7 + $0x40] sm:$0xff] %v1374_v38  ;;  %1471 = vst [vmem:[#allocation7 + $0x48] sm:$0xff] %v1375_v42  ;;  %v875_v26 = vsub.f32 %v779_v1, %v2539_v43  ;;  %v778_v40 = vmul.f32 0.00390625, %v612_v35  ;;  %1601 = vrsqrt.f32 %v969_v56  ;;  %v968_v58 = vadd.f32 1e-12, %v920_v52  ;;  %v630_v42 = vpop.xlane.xlu0 %629 }
 0x141   :  { %v1270_v10 = vmul.f32 %v4021_v5, %v1078_v31  ;;  %v1271_v48 = vmul.f32 %v4023_v9, %v1079_v33  ;;  %v1380_v8 = vadd.f32 %v2373_v21, %v1272_v28  ;;  %v1381_v46 = vadd.f32 %v2384_v16, %v1273_v11  ;;  %v4024_v31 = vld [vmem:[#allocation20_spill] sm:$0xff] }
 0x142   :  { %v1084_v24 = vmul.f32 %v1598_v7, %v3995_v36  ;;  %v1085_v38 = vmul.f32 %v1598_v7, %v2371_v30  ;;  %1603 = vrsqrt.f32 %v968_v58  ;;  %v923_v43 = vmax.f32 %v875_v26, 0.0  ;;  %v4025_v33 = vld [vmem:[#allocation104_spill] sm:$0xff] }
 0x143   :  { %v1378_v44 = vadd.f32 %v2373_v21, %v1270_v10  ;;  %v1379_v17 = vadd.f32 %v2384_v16, %v1271_v48  ;;  %1476 = vst [vmem:[#allocation7 + $0x70] sm:$0xff] %v1380_v8  ;;  %1477 = vst [vmem:[#allocation7 + $0x78] sm:$0xff] %v1381_v46  ;;  %v874_v35 = vsub.f32 %v778_v40, %v2550_v6  ;;  %v781_v1 = vmul.f32 0.00390625, %v621_v14  ;;  %v1600_v56 = vpop.eup %1599  ;;  %v639_v6 = vpop.xlane.xlu1 %638  ;;  %v4031_v8 = vld [vmem:[#allocation22_spill] sm:$0xff]  ;;  %v4032_v46 = vld [vmem:[#allocation105_spill] sm:$0xff] }
 0x144   :  { %v4026_v59 = vsub.f32 %v4024_v31, %v4025_v33  ;;  %v4028_v28 = vsub.f32 %v4027_v25, %v4025_v33  ;;  %v780_v54 = vmul.f32 0.00390625, %v618_v63  ;;  %v783_v11 = vmul.f32 0.00390625, %v627_v18  ;;  %v636_v26 = vpop.xlane.xlu0 %635  ;;  %v4030_v18 = vld [vmem:[#allocation118_spill] sm:$0xff] }
 0x145   :  { %1474 = vst [vmem:[#allocation7 + $0x60] sm:$0xff] %v1378_v44  ;;  %1475 = vst [vmem:[#allocation7 + $0x68] sm:$0xff] %v1379_v17  ;;  %v971_v52 = vadd.f32 1e-12, %v923_v43  ;;  %v922_v53 = vmax.f32 %v874_v35, 0.0  ;;  %v877_v5 = vsub.f32 %v781_v1, %v4029_v12  ;;  %v782_v10 = vmul.f32 0.00390625, %v624_v20 }
 0x146   :  { %v1276_v41 = vmul.f32 %v4026_v59, %v1084_v24  ;;  %v1277_v51 = vmul.f32 %v4028_v28, %v1085_v38  ;;  %v1082_v9 = vmul.f32 %v1600_v56, %v3995_v36  ;;  %v1083_v48 = vmul.f32 %v1600_v56, %v2371_v30  ;;  %v4034_v44 = vld [vmem:[#allocation23_spill] sm:$0xff]  ;;  %v4036_v56 = vld [vmem:[#allocation122_spill] sm:$0xff] }
 0x147   :  { %1605 = vrsqrt.f32 %v971_v52  ;;  %v970_v40 = vadd.f32 1e-12, %v922_v53  ;;  %v925_v63 = vmax.f32 %v877_v5, 0.0  ;;  %v876_v7 = vsub.f32 %v780_v54, %v4030_v18  ;;  %v645_v28 = vpop.xlane.xlu1 %644 }
 0x148   :  { %v1384_v14 = vadd.f32 %v2373_v21, %v1276_v41  ;;  %v1385_v34 = vadd.f32 %v2384_v16, %v1277_v51  ;;  %v4033_v20 = vsub.f32 %v4031_v8, %v4032_v46  ;;  %v4035_v17 = vsub.f32 %v4034_v44, %v4032_v46  ;;  %v642_v12 = vpop.xlane.xlu0 %641 }
 0x149   :  { %v879_v38 = vsub.f32 %v783_v11, %v2587_v27  ;;  %v878_v43 = vsub.f32 %v782_v10, %v2598_v32  ;;  %1607 = vrsqrt.f32 %v970_v40  ;;  %v973_v35 = vadd.f32 1e-12, %v925_v63  ;;  %v4039_v40 = vld [vmem:[#allocation106_spill] sm:$0xff] }
 0x14a   :  { %1480 = vst [vmem:[#allocation7 + $0x90] sm:$0xff] %v1384_v14  ;;  %1481 = vst [vmem:[#allocation7 + $0x98] sm:$0xff] %v1385_v34  ;;  %v1274_v58 = vmul.f32 %v4033_v20, %v1082_v9  ;;  %v1275_v24 = vmul.f32 %v4035_v17, %v1083_v48  ;;  %v924_v1 = vmax.f32 %v876_v7, 0.0  ;;  %v785_v31 = vmul.f32 0.00390625, %v633_v4  ;;  %v1602_v51 = vpop.eup %1601  ;;  %v4037_v14 = vld [vmem:[#allocation124_spill] sm:$0xff] }
 0x14b   :  { %v927_v41 = vmax.f32 %v879_v38, 0.0  ;;  %v926_v25 = vmax.f32 %v878_v43, 0.0  ;;  %1609 = vrsqrt.f32 %v973_v35  ;;  %v784_v53 = vmul.f32 0.00390625, %v630_v42  ;;  %v4038_v48 = vld [vmem:[#allocation24_spill] sm:$0xff]  ;;  %v4041_v42 = vld [vmem:[#allocation25_spill] sm:$0xff]  ;;  %v4043_v38 = vld [vmem:[#allocation26_spill] sm:$0xff] }
 0x14c   :  { %v1382_v33 = vadd.f32 %v2373_v21, %v1274_v58  ;;  %v1383_v59 = vadd.f32 %v2384_v16, %v1275_v24  ;;  %v972_v54 = vadd.f32 1e-12, %v924_v1  ;;  %v881_v52 = vsub.f32 %v785_v31, %v4036_v56  ;;  %v1604_v5 = vpop.eup %1603  ;;  %v4044_v43 = vld [vmem:[#allocation107_spill] sm:$0xff] }
 0x14d   :  { %v1088_v32 = vmul.f32 %v1602_v51, %v3995_v36  ;;  %v1089_v27 = vmul.f32 %v1602_v51, %v2371_v30  ;;  %v975_v4 = vadd.f32 1e-12, %v927_v41  ;;  %v974_v11 = vadd.f32 1e-12, %v926_v25  ;;  %v4046_v31 = vld [vmem:[#allocation27_spill] sm:$0xff]  ;;  %v3048_v41 = vpop.xlane.xlu1 %650 }
 0x14e   :  { %1478 = vst [vmem:[#allocation7 + $0x80] sm:$0xff] %v1382_v33  ;;  %1479 = vst [vmem:[#allocation7 + $0x88] sm:$0xff] %v1383_v59  ;;  %1611 = vrsqrt.f32 %v972_v54  ;;  %v929_v10 = vmax.f32 %v881_v52, 0.0  ;;  %v880_v34 = vsub.f32 %v784_v53, %v4037_v14  ;;  %v787_v9 = vmul.f32 0.00390625, %v639_v6  ;;  %v4049_v14 = vld [vmem:[#allocation108_spill] sm:$0xff] }
 0x14f   :  { %v4040_v63 = vsub.f32 %v4038_v48, %v4039_v40  ;;  %v4042_v7 = vsub.f32 %v4041_v42, %v4039_v40  ;;  %v1086_v46 = vmul.f32 %v1604_v5, %v3995_v36  ;;  %v1087_v20 = vmul.f32 %v1604_v5, %v2371_v30  ;;  %v4051_v48 = vld [vmem:[#allocation29_spill] sm:$0xff] }
 0x150   :  { %1613 = vrsqrt.f32 %v975_v4  ;;  %v977_v58 = vadd.f32 1e-12, %v929_v10  ;;  %v928_v44 = vmax.f32 %v880_v34, 0.0  ;;  %v883_v17 = vsub.f32 %v787_v9, %v2635_v0 }
 0x151   :  { %v1280_v18 = vmul.f32 %v4040_v63, %v1088_v32  ;;  %v1281_v8 = vmul.f32 %v4042_v7, %v1089_v27  ;;  %v4045_v35 = vsub.f32 %v4043_v38, %v4044_v43  ;;  %v4047_v33 = vsub.f32 %v4046_v31, %v4044_v43  ;;  %v1606_v25 = vpop.eup %1605  ;;  %v3054_v27 = vpop.xlane.xlu0 %647  ;;  %v4057_v38 = vld [vmem:[#allocation31_spill] sm:$0xff] }
 0x152   :  { %1615 = vrsqrt.f32 %v974_v11  ;;  %v976_v51 = vadd.f32 1e-12, %v928_v44  ;;  %v931_v54 = vmax.f32 %v883_v17, 0.0  ;;  %v786_v56 = vmul.f32 0.00390625, %v636_v26  ;;  %v4048_v26 = vld [vmem:[#allocation28_spill] sm:$0xff]  ;;  %v4054_v44 = vld [vmem:[#allocation30_spill] sm:$0xff] }
 0x153   :  { %v1388_v24 = vadd.f32 %v2373_v21, %v1280_v18  ;;  %v1389_v6 = vadd.f32 %v2384_v16, %v1281_v8  ;;  %v1278_v1 = vmul.f32 %v4045_v35, %v1086_v46  ;;  %v1279_v59 = vmul.f32 %v4047_v33, %v1087_v20  ;;  %v1608_v4 = vpop.eup %1607  ;;  %v4053_v46 = vld [vmem:[#allocation128_spill] sm:$0xff]  ;;  %v4055_v17 = vld [vmem:[#allocation109_spill] sm:$0xff] }
 0x154   :  { %v1092_v53 = vmul.f32 %v1606_v25, %v3995_v36  ;;  %v1093_v32 = vmul.f32 %v1606_v25, %v2371_v30  ;;  %1617 = vrsqrt.f32 %v977_v58  ;;  %v979_v5 = vadd.f32 1e-12, %v931_v54 }
 0x155   :  { %1484 = vst [vmem:[#allocation7 + $0xb0] sm:$0xff] %v1388_v24  ;;  %1485 = vst [vmem:[#allocation7 + $0xb8] sm:$0xff] %v1389_v6  ;;  %v1386_v0 = vadd.f32 %v2373_v21, %v1278_v1  ;;  %v1387_v52 = vadd.f32 %v2384_v16, %v1279_v59  ;;  %v882_v11 = vsub.f32 %v786_v56, %v2646_v61  ;;  %v789_v10 = vmul.f32 0.00390625, %v645_v28  ;;  %v1610_v7 = vpop.eup %1609  ;;  %v3074_v1 = vpop.xlane.xlu1 %656 }
 0x156   :  { %v4050_v34 = vsub.f32 %v4048_v26, %v4049_v14  ;;  %v4052_v40 = vsub.f32 %v4051_v48, %v4049_v14  ;;  %v1090_v18 = vmul.f32 %v1608_v4, %v3995_v36  ;;  %v1091_v42 = vmul.f32 %v1608_v4, %v2371_v30 }
 0x157   :  { %1482 = vst [vmem:[#allocation7 + $0xa0] sm:$0xff] %v1386_v0  ;;  %1483 = vst [vmem:[#allocation7 + $0xa8] sm:$0xff] %v1387_v52  ;;  %1619 = vrsqrt.f32 %v976_v51  ;;  %v930_v8 = vmax.f32 %v882_v11, 0.0  ;;  %v885_v61 = vsub.f32 %v789_v10, %v4053_v46  ;;  %v788_v28 = vmul.f32 0.00390625, %v642_v12  ;;  %v3082_v0 = vpop.xlane.xlu0 %653  ;;  %v4062_v10 = vld [vmem:[#allocation33_spill] sm:$0xff] }
 0x158   :  { %v1284_v9 = vmul.f32 %v4050_v34, %v1092_v53  ;;  %v1285_v63 = vmul.f32 %v4052_v40, %v1093_v32  ;;  %v4056_v24 = vsub.f32 %v4054_v44, %v4055_v17  ;;  %v4058_v43 = vsub.f32 %v4057_v38, %v4055_v17  ;;  %v1612_v31 = vpop.eup %1611  ;;  %v4059_v53 = vld [vmem:[#allocation32_spill] sm:$0xff]  ;;  %v4060_v32 = vld [vmem:[#allocation110_spill] sm:$0xff] }
 0x159   :  { %v1096_v33 = vmul.f32 %v1610_v7, %v3995_v36  ;;  %v1097_v59 = vmul.f32 %v1610_v7, %v2371_v30  ;;  %1621 = vrsqrt.f32 %v979_v5  ;;  %v978_v12 = vadd.f32 1e-12, %v930_v8  ;;  %v4064_v34 = vld [vmem:[#allocation34_spill] sm:$0xff]  ;;  %v4070_v38 = vld [vmem:[#allocation36_spill] sm:$0xff] }
 0x15a   :  { %v1392_v20 = vadd.f32 %v2373_v21, %v1284_v9  ;;  %v1393_v58 = vadd.f32 %v2384_v16, %v1285_v63  ;;  %v1282_v6 = vmul.f32 %v4056_v24, %v1090_v18  ;;  %v1283_v35 = vmul.f32 %v4058_v43, %v1091_v42  ;;  %v1614_v52 = vpop.eup %1613  ;;  %v4065_v9 = vld [vmem:[#allocation111_spill] sm:$0xff]  ;;  %v4069_v44 = vld [vmem:[#allocation130_spill] sm:$0xff]  ;;  %v4071_v43 = vld [vmem:[#allocation112_spill] sm:$0xff] }
 0x15b   :  { %v1094_v54 = vmul.f32 %v1612_v31, %v3995_v36  ;;  %v1095_v56 = vmul.f32 %v1612_v31, %v2371_v30  ;;  %v4061_v4 = vsub.f32 %v4059_v53, %v4060_v32  ;;  %v4063_v5 = vsub.f32 %v4062_v10, %v4060_v32  ;;  %v4067_v63 = vld [vmem:[#allocation35_spill] sm:$0xff] }
 0x15c   :  { %1488 = vst [vmem:[#allocation7 + $0xd0] sm:$0xff] %v1392_v20  ;;  %1489 = vst [vmem:[#allocation7 + $0xd8] sm:$0xff] %v1393_v58  ;;  %v1390_v25 = vadd.f32 %v2373_v21, %v1282_v6  ;;  %v1391_v51 = vadd.f32 %v2384_v16, %v1283_v35  ;;  %1623 = vrsqrt.f32 %v978_v12  ;;  %v933_v14 = vmax.f32 %v885_v61, 0.0  ;;  %v1616_v46 = vpop.eup %1615 }
 0x15d   :  { %v1288_v11 = vmul.f32 %v4061_v4, %v1096_v33  ;;  %v1289_v26 = vmul.f32 %v4063_v5, %v1097_v59  ;;  %v4066_v48 = vsub.f32 %v4064_v34, %v4065_v9  ;;  %v4068_v18 = vsub.f32 %v4067_v63, %v4065_v9  ;;  %v4073_v33 = vld [vmem:[#allocation37_spill] sm:$0xff]  ;;  %v4075_v5 = vld [vmem:[#allocation38_spill] sm:$0xff]  ;;  %v4078_v9 = vld [vmem:[#allocation39_spill] sm:$0xff] }
 0x15e   :  { %1486 = vst [vmem:[#allocation7 + $0xc0] sm:$0xff] %v1390_v25  ;;  %1487 = vst [vmem:[#allocation7 + $0xc8] sm:$0xff] %v1391_v51  ;;  %v1100_v7 = vmul.f32 %v1614_v52, %v3995_v36  ;;  %v1101_v8 = vmul.f32 %v1614_v52, %v2371_v30  ;;  %v981_v61 = vadd.f32 1e-12, %v933_v14  ;;  %v884_v17 = vsub.f32 %v788_v28, %v4069_v44  ;;  %v3109_v25 = vpop.xlane.xlu1 %662  ;;  %v1618_v51 = vpop.eup %1617 }
 0x15f   :  { %v1286_v40 = vmul.f32 %v4066_v48, %v1094_v54  ;;  %v1287_v42 = vmul.f32 %v4068_v18, %v1095_v56  ;;  %v1396_v20 = vadd.f32 %v2373_v21, %v1288_v11  ;;  %v1397_v58 = vadd.f32 %v2384_v16, %v1289_v26  ;;  %v3117_v11 = vpop.xlane.xlu0 %659  ;;  %v4076_v26 = vld [vmem:[#allocation113_spill] sm:$0xff] }
 0x160   :  { %v4072_v35 = vsub.f32 %v4070_v38, %v4071_v43  ;;  %v4074_v59 = vsub.f32 %v4073_v33, %v4071_v43  ;;  %v1098_v54 = vmul.f32 %v1616_v46, %v3995_v36  ;;  %v1099_v28 = vmul.f32 %v1616_v46, %v2371_v30  ;;  %v4086_v33 = vld [vmem:[#allocation115_spill] sm:$0xff] }
 0x161   :  { %v1394_v24 = vadd.f32 %v2373_v21, %v1286_v40  ;;  %v1395_v6 = vadd.f32 %v2384_v16, %v1287_v42  ;;  %1492 = vst [vmem:[#allocation7 + $0xf0] sm:$0xff] %v1396_v20  ;;  %1493 = vst [vmem:[#allocation7 + $0xf8] sm:$0xff] %v1397_v58  ;;  %1625 = vrsqrt.f32 %v981_v61  ;;  %v932_v56 = vmax.f32 %v884_v17, 0.0  ;;  %v1620_v10 = vpop.eup %1619  ;;  %v4080_v42 = vld [vmem:[#allocation40_spill] sm:$0xff]  ;;  %v4083_v20 = vld [vmem:[#allocation41_spill] sm:$0xff] }
 0x162   :  { %v1292_v31 = vmul.f32 %v4072_v35, %v1100_v7  ;;  %v1293_v12 = vmul.f32 %v4074_v59, %v1101_v8  ;;  %v1104_v32 = vmul.f32 %v1618_v51, %v3995_v36  ;;  %v1105_v4 = vmul.f32 %v1618_v51, %v2371_v30  ;;  %v4081_v7 = vld [vmem:[#allocation114_spill] sm:$0xff]  ;;  %v4088_v51 = vld [vmem:[#allocation43_spill] sm:$0xff] }
 0x163   :  { %1490 = vst [vmem:[#allocation7 + $0xe0] sm:$0xff] %v1394_v24  ;;  %1491 = vst [vmem:[#allocation7 + $0xe8] sm:$0xff] %v1395_v6  ;;  %v4077_v14 = vsub.f32 %v4075_v5, %v4076_v26  ;;  %v4079_v48 = vsub.f32 %v4078_v9, %v4076_v26  ;;  %v980_v63 = vadd.f32 1e-12, %v932_v56  ;;  %v791_v18 = vmul.f32 0.00390625, %v3048_v41  ;;  %v1622_v24 = vpop.eup %1621  ;;  %v669_v56 = vpop.xlane.xlu1 %668  ;;  %v4090_v9 = vld [vmem:[#allocation44_spill] sm:$0xff] }
 0x164   :  { %v1400_v52 = vadd.f32 %v2373_v21, %v1292_v31  ;;  %v1401_v53 = vadd.f32 %v2384_v16, %v1293_v12  ;;  %v4082_v8 = vsub.f32 %v4080_v42, %v4081_v7  ;;  %v4084_v58 = vsub.f32 %v4083_v20, %v4081_v7  ;;  %v4085_v31 = vld [vmem:[#allocation42_spill] sm:$0xff]  ;;  %v4096_v20 = vld [vmem:[#allocation119_spill] sm:$0xff] }
 0x165   :  { %v1290_v34 = vmul.f32 %v4077_v14, %v1098_v54  ;;  %v1291_v40 = vmul.f32 %v4079_v48, %v1099_v28  ;;  %v1102_v44 = vmul.f32 %v1620_v10, %v3995_v36  ;;  %v1103_v17 = vmul.f32 %v1620_v10, %v2371_v30  ;;  %v4091_v48 = vld [vmem:[#allocation117_spill] sm:$0xff] }
 0x166   :  { %1496 = vst [vmem:[#allocation7 + $0x110] sm:$0xff] %v1400_v52  ;;  %1497 = vst [vmem:[#allocation7 + $0x118] sm:$0xff] %v1401_v53  ;;  %v1296_v46 = vmul.f32 %v4082_v8, %v1104_v32  ;;  %v1297_v61 = vmul.f32 %v4084_v58, %v1105_v4  ;;  %1627 = vrsqrt.f32 %v980_v63  ;;  %v887_v41 = vsub.f32 %v791_v18, %v2683_v15  ;;  %v1624_v52 = vpop.eup %1623  ;;  %v4093_v18 = vld [vmem:[#allocation45_spill] sm:$0xff] }
 0x167   :  { %v1398_v6 = vadd.f32 %v2373_v21, %v1290_v34  ;;  %v1399_v38 = vadd.f32 %v2384_v16, %v1291_v40  ;;  %v4087_v59 = vsub.f32 %v4085_v31, %v4086_v33  ;;  %v4089_v54 = vsub.f32 %v4088_v51, %v4086_v33  ;;  %v666_v34 = vpop.xlane.xlu0 %665  ;;  %v675_v51 = vpop.xlane.xlu1 %674 }
 0x168   :  { %v1404_v43 = vadd.f32 %v2373_v21, %v1296_v46  ;;  %v1405_v35 = vadd.f32 %v2384_v16, %v1297_v61  ;;  %v1108_v53 = vmul.f32 %v1622_v24, %v3995_v36  ;;  %v1109_v15 = vmul.f32 %v1622_v24, %v2371_v30  ;;  %v4095_v46 = vld [vmem:[#allocation46_spill] sm:$0xff] }
 0x169   :  { %v1294_v12 = vmul.f32 %v4087_v59, %v1102_v44  ;;  %v1295_v28 = vmul.f32 %v4089_v54, %v1103_v17  ;;  %1494 = vst [vmem:[#allocation7 + $0x100] sm:$0xff] %v1398_v6  ;;  %1495 = vst [vmem:[#allocation7 + $0x108] sm:$0xff] %v1399_v38  ;;  %v935_v32 = vmax.f32 %v887_v41, 0.0  ;;  %v790_v4 = vmul.f32 0.00390625, %v3054_v27  ;;  %v4098_v44 = vld [vmem:[#allocation47_spill] sm:$0xff] }
 0x16a   :  { %1500 = vst [vmem:[#allocation7 + $0x130] sm:$0xff] %v1404_v43  ;;  %1501 = vst [vmem:[#allocation7 + $0x138] sm:$0xff] %v1405_v35  ;;  %v1106_v26 = vmul.f32 %v1624_v52, %v3995_v36  ;;  %v1107_v14 = vmul.f32 %v1624_v52, %v2371_v30  ;;  %v4092_v40 = vsub.f32 %v4090_v9, %v4091_v48  ;;  %v793_v6 = vmul.f32 0.00390625, %v3074_v1 }
 0x16b   :  { %v1402_v10 = vadd.f32 %v2373_v21, %v1294_v12  ;;  %v1403_v5 = vadd.f32 %v2384_v16, %v1295_v28  ;;  %v4094_v42 = vsub.f32 %v4093_v18, %v4091_v48  ;;  %v983_v27 = vadd.f32 1e-12, %v935_v32  ;;  %v1626_v41 = vpop.eup %1625  ;;  %v4101_v28 = vld [vmem:[#allocation136_spill] sm:$0xff] }
 0x16c   :  { %v1300_v63 = vmul.f32 %v4092_v40, %v1108_v53  ;;  %v886_v8 = vsub.f32 %v790_v4, %v2694_v47  ;;  %v4097_v58 = vsub.f32 %v4095_v46, %v4096_v20  ;;  %v4099_v17 = vsub.f32 %v4098_v44, %v4096_v20  ;;  %v4103_v32 = vld [vmem:[#allocation120_spill] sm:$0xff]  ;;  %v672_v40 = vpop.xlane.xlu0 %671  ;;  %v4108_v44 = vld [vmem:[#allocation121_spill] sm:$0xff] }
 0x16d   :  { %v1301_v7 = vmul.f32 %v4094_v42, %v1109_v15  ;;  %1498 = vst [vmem:[#allocation7 + $0x120] sm:$0xff] %v1402_v10  ;;  %1499 = vst [vmem:[#allocation7 + $0x128] sm:$0xff] %v1403_v5  ;;  %v792_v38 = vmul.f32 0.00390625, %v3082_v0  ;;  %1629 = vrsqrt.f32 %v983_v27  ;;  %v1112_v59 = vmul.f32 %v1626_v41, %v3995_v36  ;;  %v4100_v0 = vld [vmem:[#allocation134_spill] sm:$0xff]  ;;  %v4102_v15 = vld [vmem:[#allocation48_spill] sm:$0xff] }
 0x16e   :  { %v1298_v61 = vmul.f32 %v4097_v58, %v1106_v26  ;;  %v1299_v24 = vmul.f32 %v4099_v17, %v1107_v14  ;;  %v1408_v43 = vadd.f32 %v2373_v21, %v1300_v63  ;;  %v934_v47 = vmax.f32 %v886_v8, 0.0  ;;  %v4105_v5 = vld [vmem:[#allocation49_spill] sm:$0xff] }
 0x16f   :  { %v1409_v35 = vadd.f32 %v2384_v16, %v1301_v7  ;;  %v1113_v12 = vmul.f32 %v1626_v41, %v2371_v30  ;;  %v889_v54 = vsub.f32 %v793_v6, %v4100_v0  ;;  %v888_v52 = vsub.f32 %v792_v38, %v4101_v28  ;;  %v4112_v41 = vld [vmem:[#allocation140_spill] sm:$0xff] }
 0x170   :  { %v1406_v31 = vadd.f32 %v2373_v21, %v1298_v61  ;;  %v1407_v33 = vadd.f32 %v2384_v16, %v1299_v24  ;;  %1504 = vst [vmem:[#allocation7 + $0x150] sm:$0xff] %v1408_v43  ;;  %v982_v1 = vadd.f32 1e-12, %v934_v47  ;;  %v795_v53 = vmul.f32 0.00390625, %v3109_v25  ;;  %v1628_v63 = vpop.eup %1627  ;;  %v681_v47 = vpop.xlane.xlu1 %680 }
 0x171   :  { %1505 = vst [vmem:[#allocation7 + $0x158] sm:$0xff] %v1409_v35  ;;  %v4104_v4 = vsub.f32 %v4102_v15, %v4103_v32  ;;  %v4106_v26 = vsub.f32 %v4105_v5, %v4103_v32  ;;  %v794_v9 = vmul.f32 0.00390625, %v3117_v11  ;;  %v797_v48 = vmul.f32 0.00390625, %v669_v56  ;;  %v4107_v56 = vld [vmem:[#allocation50_spill] sm:$0xff]  ;;  %v678_v0 = vpop.xlane.xlu0 %677 }
 0x172   :  { %1502 = vst [vmem:[#allocation7 + $0x140] sm:$0xff] %v1406_v31  ;;  %1503 = vst [vmem:[#allocation7 + $0x148] sm:$0xff] %v1407_v33  ;;  %1631 = vrsqrt.f32 %v982_v1  ;;  %v937_v18 = vmax.f32 %v889_v54, 0.0  ;;  %v936_v42 = vmax.f32 %v888_v52, 0.0  ;;  %v891_v25 = vsub.f32 %v795_v53, %v2731_v57  ;;  %v4110_v57 = vld [vmem:[#allocation51_spill] sm:$0xff]  ;;  %v4113_v52 = vld [vmem:[#allocation142_spill] sm:$0xff] }
 0x173   :  { %v1304_v10 = vmul.f32 %v4104_v4, %v1112_v59  ;;  %v1305_v14 = vmul.f32 %v4106_v26, %v1113_v12  ;;  %v1110_v8 = vmul.f32 %v1628_v63, %v3995_v36  ;;  %v1111_v46 = vmul.f32 %v1628_v63, %v2371_v30 }
 0x174   :  { %v985_v20 = vadd.f32 1e-12, %v937_v18  ;;  %v984_v58 = vadd.f32 1e-12, %v936_v42  ;;  %v939_v61 = vmax.f32 %v891_v25, 0.0  ;;  %v890_v11 = vsub.f32 %v794_v9, %v2742_v55  ;;  %v4115_v9 = vld [vmem:[#allocation123_spill] sm:$0xff] }
 0x175   :  { %v1412_v7 = vadd.f32 %v2373_v21, %v1304_v10  ;;  %v1413_v27 = vadd.f32 %v2384_v16, %v1305_v14  ;;  %v4109_v17 = vsub.f32 %v4107_v56, %v4108_v44  ;;  %v4111_v6 = vsub.f32 %v4110_v57, %v4108_v44  ;;  %v4114_v14 = vld [vmem:[#allocation52_spill] sm:$0xff]  ;;  %v4117_v18 = vld [vmem:[#allocation53_spill] sm:$0xff] }
 0x176   :  { %v893_v43 = vsub.f32 %v797_v48, %v4112_v41  ;;  %v796_v35 = vmul.f32 0.00390625, %v666_v34  ;;  %1633 = vrsqrt.f32 %v985_v20  ;;  %v987_v31 = vadd.f32 1e-12, %v939_v61  ;;  %v4119_v25 = vld [vmem:[#allocation145_spill] sm:$0xff]  ;;  %v4121_v41 = vld [vmem:[#allocation54_spill] sm:$0xff] }
 0x177   :  { %1508 = vst [vmem:[#allocation7 + $0x170] sm:$0xff] %v1412_v7  ;;  %1509 = vst [vmem:[#allocation7 + $0x178] sm:$0xff] %v1413_v27  ;;  %v1302_v24 = vmul.f32 %v4109_v17, %v1110_v8  ;;  %v1303_v38 = vmul.f32 %v4111_v6, %v1111_v46  ;;  %v938_v33 = vmax.f32 %v890_v11, 0.0  ;;  %v799_v59 = vmul.f32 0.00390625, %v675_v51  ;;  %v1630_v54 = vpop.eup %1629  ;;  %v687_v27 = vpop.xlane.xlu1 %686 }
 0x178   :  { %1635 = vrsqrt.f32 %v984_v58  ;;  %v941_v1 = vmax.f32 %v893_v43, 0.0  ;;  %v892_v53 = vsub.f32 %v796_v35, %v4113_v52  ;;  %v1116_v34 = vmul.f32 %v1630_v54, %v3995_v36  ;;  %v4122_v43 = vld [vmem:[#allocation125_spill] sm:$0xff] }
 0x179   :  { %v1410_v55 = vadd.f32 %v2373_v21, %v1302_v24  ;;  %v1411_v12 = vadd.f32 %v2384_v16, %v1303_v38  ;;  %1637 = vrsqrt.f32 %v987_v31  ;;  %v986_v28 = vadd.f32 1e-12, %v938_v33  ;;  %v684_v24 = vpop.xlane.xlu0 %683  ;;  %v4124_v31 = vld [vmem:[#allocation55_spill] sm:$0xff] }
 0x17a   :  { %v895_v15 = vsub.f32 %v799_v59, %v2779_v29  ;;  %v1117_v51 = vmul.f32 %v1630_v54, %v2371_v30  ;;  %v989_v32 = vadd.f32 1e-12, %v941_v1  ;;  %v798_v4 = vmul.f32 0.00390625, %v672_v40  ;;  %v4120_v40 = vld [vmem:[#allocation146_spill] sm:$0xff] }
 0x17b   :  { %1506 = vst [vmem:[#allocation7 + $0x160] sm:$0xff] %v1410_v55  ;;  %1507 = vst [vmem:[#allocation7 + $0x168] sm:$0xff] %v1411_v12  ;;  %1639 = vrsqrt.f32 %v986_v28  ;;  %v940_v10 = vmax.f32 %v892_v53, 0.0  ;;  %v801_v26 = vmul.f32 0.00390625, %v681_v47  ;;  %v4116_v48 = vsub.f32 %v4114_v14, %v4115_v9  ;;  %v4127_v14 = vld [vmem:[#allocation126_spill] sm:$0xff] }
 0x17c   :  { %v943_v5 = vmax.f32 %v895_v15, 0.0  ;;  %v4118_v42 = vsub.f32 %v4117_v18, %v4115_v9  ;;  %1641 = vrsqrt.f32 %v989_v32  ;;  %v894_v7 = vsub.f32 %v798_v4, %v4119_v25  ;;  %v1632_v8 = vpop.eup %1631 }
 0x17d   :  { %v1308_v63 = vmul.f32 %v4116_v48, %v1116_v34  ;;  %v988_v46 = vadd.f32 1e-12, %v940_v10  ;;  %v897_v58 = vsub.f32 %v801_v26, %v4120_v40  ;;  %v800_v61 = vmul.f32 0.00390625, %v678_v0  ;;  %v4126_v26 = vld [vmem:[#allocation56_spill] sm:$0xff] }
 0x17e   :  { %v1309_v29 = vmul.f32 %v4118_v42, %v1117_v51  ;;  %v991_v20 = vadd.f32 1e-12, %v943_v5  ;;  %v1114_v44 = vmul.f32 %v1632_v8, %v3995_v36  ;;  %v1115_v17 = vmul.f32 %v1632_v8, %v2371_v30  ;;  %v3227_v51 = vpop.xlane.xlu1 %692  ;;  %v4131_v8 = vld [vmem:[#allocation58_spill] sm:$0xff] }
 0x17f   :  { %v1416_v11 = vadd.f32 %v2373_v21, %v1308_v63  ;;  %1643 = vrsqrt.f32 %v988_v46  ;;  %v942_v57 = vmax.f32 %v894_v7, 0.0  ;;  %v945_v6 = vmax.f32 %v897_v58, 0.0  ;;  %v4129_v63 = vld [vmem:[#allocation57_spill] sm:$0xff]  ;;  %v3239_v7 = vpop.xlane.xlu0 %689  ;;  %v4132_v46 = vld [vmem:[#allocation127_spill] sm:$0xff] }
 0x180   :  { %v1417_v56 = vadd.f32 %v2384_v16, %v1309_v29  ;;  %v896_v38 = vsub.f32 %v800_v61, %v2802_v39  ;;  %v4123_v35 = vsub.f32 %v4121_v41, %v4122_v43  ;;  %v4125_v33 = vsub.f32 %v4124_v31, %v4122_v43  ;;  %v1634_v12 = vpop.eup %1633  ;;  %v4134_v58 = vld [vmem:[#allocation59_spill] sm:$0xff] }
 0x181   :  { %1512 = vst [vmem:[#allocation7 + $0x190] sm:$0xff] %v1416_v11  ;;  %1645 = vrsqrt.f32 %v991_v20  ;;  %v803_v55 = vmul.f32 0.00390625, %v687_v27  ;;  %v990_v1 = vadd.f32 1e-12, %v942_v57  ;;  %v993_v0 = vadd.f32 1e-12, %v945_v6 }
 0x182   :  { %1513 = vst [vmem:[#allocation7 + $0x198] sm:$0xff] %v1417_v56  ;;  %v1306_v47 = vmul.f32 %v4123_v35, %v1114_v44  ;;  %v1307_v59 = vmul.f32 %v4125_v33, %v1115_v17  ;;  %v944_v54 = vmax.f32 %v896_v38, 0.0  ;;  %v3221_v28 = vmul.f32 0.00390625, %v684_v24  ;;  %v1636_v52 = vpop.eup %1635  ;;  %v4136_v56 = vld [vmem:[#allocation149_spill] sm:$0xff]  ;;  %v4137_v6 = vld [vmem:[#allocation60_spill] sm:$0xff] }
 0x183   :  { %v1120_v15 = vmul.f32 %v1634_v12, %v3995_v36  ;;  %v1121_v34 = vmul.f32 %v1634_v12, %v2371_v30  ;;  %v1638_v32 = vpop.eup %1637  ;;  %v1118_v4 = vmul.f32 %v1636_v52, %v3995_v36  ;;  %v1119_v10 = vmul.f32 %v1636_v52, %v2371_v30  ;;  %v4138_v38 = vld [vmem:[#allocation129_spill] sm:$0xff] }
 0x184   :  { %v1414_v39 = vadd.f32 %v2373_v21, %v1306_v47  ;;  %v1415_v53 = vadd.f32 %v2384_v16, %v1307_v59  ;;  %1647 = vrsqrt.f32 %v990_v1  ;;  %v992_v5 = vadd.f32 1e-12, %v944_v54  ;;  %v4140_v35 = vld [vmem:[#allocation61_spill] sm:$0xff] }
 0x185   :  { %v4128_v9 = vsub.f32 %v4126_v26, %v4127_v14  ;;  %v4130_v18 = vsub.f32 %v4129_v63, %v4127_v14  ;;  %v1124_v29 = vmul.f32 %v1638_v32, %v3995_v36  ;;  %v1125_v25 = vmul.f32 %v1638_v32, %v2371_v30  ;;  %v1640_v27 = vpop.eup %1639  ;;  %v4147_v63 = vld [vmem:[#allocation64_spill] sm:$0xff] }
 0x186   :  { %1510 = vst [vmem:[#allocation7 + $0x180] sm:$0xff] %v1414_v39  ;;  %1511 = vst [vmem:[#allocation7 + $0x188] sm:$0xff] %v1415_v53  ;;  %v4133_v20 = vsub.f32 %v4131_v8, %v4132_v46  ;;  %v4135_v61 = vsub.f32 %v4134_v58, %v4132_v46  ;;  %1649 = vrsqrt.f32 %v993_v0  ;;  %v899_v44 = vsub.f32 %v803_v55, %v4136_v56  ;;  %v1642_v17 = vpop.eup %1641  ;;  %v699_v39 = vpop.xlane.xlu1 %698 }
 0x187   :  { %v1312_v48 = vmul.f32 %v4128_v9, %v1120_v15  ;;  %v1313_v42 = vmul.f32 %v4130_v18, %v1121_v34  ;;  %v4139_v41 = vsub.f32 %v4137_v6, %v4138_v38  ;;  %v4141_v47 = vsub.f32 %v4140_v35, %v4138_v38  ;;  %v4142_v15 = vld [vmem:[#allocation62_spill] sm:$0xff]  ;;  %v4143_v34 = vld [vmem:[#allocation131_spill] sm:$0xff]  ;;  %v4148_v18 = vld [vmem:[#allocation132_spill] sm:$0xff] }
 0x188   :  { %v1310_v40 = vmul.f32 %v4133_v20, %v1118_v4  ;;  %v1311_v11 = vmul.f32 %v4135_v61, %v1119_v10  ;;  %v1122_v12 = vmul.f32 %v1640_v27, %v3995_v36  ;;  %v1123_v55 = vmul.f32 %v1640_v27, %v2371_v30  ;;  %v4145_v10 = vld [vmem:[#allocation63_spill] sm:$0xff] }
 0x189   :  { %v1420_v24 = vadd.f32 %v2373_v21, %v1312_v48  ;;  %v1421_v57 = vadd.f32 %v2384_v16, %v1313_v42  ;;  %v1316_v43 = vmul.f32 %v4139_v41, %v1124_v29  ;;  %v1317_v31 = vmul.f32 %v4141_v47, %v1125_v25  ;;  %v1644_v53 = vpop.eup %1643  ;;  %v4150_v25 = vld [vmem:[#allocation65_spill] sm:$0xff]  ;;  %v4155_v38 = vld [vmem:[#allocation67_spill] sm:$0xff]  ;;  %v4157_v47 = vld [vmem:[#allocation68_spill] sm:$0xff] }
 0x18a   :  { %v1418_v33 = vadd.f32 %v2373_v21, %v1310_v40  ;;  %v1419_v59 = vadd.f32 %v2384_v16, %v1311_v11  ;;  %v1128_v54 = vmul.f32 %v1642_v17, %v3995_v36  ;;  %v1129_v52 = vmul.f32 %v1642_v17, %v2371_v30  ;;  %v696_v40 = vpop.xlane.xlu0 %695  ;;  %v4152_v17 = vld [vmem:[#allocation66_spill] sm:$0xff] }
 0x18b   :  { %1516 = vst [vmem:[#allocation7 + $0x1b0] sm:$0xff] %v1420_v24  ;;  %1517 = vst [vmem:[#allocation7 + $0x1b8] sm:$0xff] %v1421_v57  ;;  %v1424_v1 = vadd.f32 %v2373_v21, %v1316_v43  ;;  %v1425_v0 = vadd.f32 %v2384_v16, %v1317_v31  ;;  %v4144_v32 = vsub.f32 %v4142_v15, %v4143_v34  ;;  %1651 = vrsqrt.f32 %v992_v5  ;;  %v1646_v48 = vpop.eup %1645  ;;  %v4153_v24 = vld [vmem:[#allocation133_spill] sm:$0xff]  ;;  %v4158_v31 = vld [vmem:[#allocation135_spill] sm:$0xff] }
 0x18c   :  { %1514 = vst [vmem:[#allocation7 + $0x1a0] sm:$0xff] %v1418_v33  ;;  %1515 = vst [vmem:[#allocation7 + $0x1a8] sm:$0xff] %v1419_v59  ;;  %v4146_v26 = vsub.f32 %v4145_v10, %v4143_v34  ;;  %v947_v9 = vmax.f32 %v899_v44, 0.0  ;;  %v4149_v42 = vsub.f32 %v4147_v63, %v4148_v18  ;;  %v4151_v27 = vsub.f32 %v4150_v25, %v4148_v18 }
 0x18d   :  { %v1314_v4 = vmul.f32 %v4144_v32, %v1122_v12  ;;  %1520 = vst [vmem:[#allocation7 + $0x1d0] sm:$0xff] %v1424_v1  ;;  %1521 = vst [vmem:[#allocation7 + $0x1d8] sm:$0xff] %v1425_v0  ;;  %v1126_v46 = vmul.f32 %v1644_v53, %v3995_v36  ;;  %v1127_v20 = vmul.f32 %v1644_v53, %v2371_v30  ;;  %v4160_v12 = vld [vmem:[#allocation69_spill] sm:$0xff] }
 0x18e   :  { %v1315_v14 = vmul.f32 %v4146_v26, %v1123_v55  ;;  %v1320_v29 = vmul.f32 %v4149_v42, %v1128_v54  ;;  %v1321_v8 = vmul.f32 %v4151_v27, %v1129_v52  ;;  %v1132_v61 = vmul.f32 %v1646_v48, %v3995_v36  ;;  %v1648_v35 = vpop.eup %1647  ;;  %v4162_v54 = vld [vmem:[#allocation150_spill] sm:$0xff]  ;;  %v4166_v42 = vld [vmem:[#allocation71_spill] sm:$0xff] }
 0x18f   :  { %v1422_v58 = vadd.f32 %v2373_v21, %v1314_v4  ;;  %v1133_v11 = vmul.f32 %v1646_v48, %v2371_v30  ;;  %v4154_v57 = vsub.f32 %v4152_v17, %v4153_v24  ;;  %v4156_v41 = vsub.f32 %v4155_v38, %v4153_v24  ;;  %v705_v4 = vpop.xlane.xlu1 %704  ;;  %v4164_v48 = vld [vmem:[#allocation137_spill] sm:$0xff]  ;;  %v4169_v17 = vld [vmem:[#allocation138_spill] sm:$0xff] }
 0x190   :  { %v1423_v5 = vadd.f32 %v2384_v16, %v1315_v14  ;;  %v1428_v56 = vadd.f32 %v2373_v21, %v1320_v29  ;;  %v1429_v44 = vadd.f32 %v2384_v16, %v1321_v8  ;;  %v4159_v33 = vsub.f32 %v4157_v47, %v4158_v31  ;;  %v1650_v10 = vpop.eup %1649 }
 0x191   :  { %v1318_v6 = vmul.f32 %v4154_v57, %v1126_v46  ;;  %v1319_v43 = vmul.f32 %v4156_v41, %v1127_v20  ;;  %1518 = vst [vmem:[#allocation7 + $0x1c0] sm:$0xff] %v1422_v58  ;;  %v4161_v55 = vsub.f32 %v4160_v12, %v4158_v31  ;;  %v995_v0 = vadd.f32 1e-12, %v947_v9  ;;  %v702_v46 = vpop.xlane.xlu0 %701 }
 0x192   :  { %1519 = vst [vmem:[#allocation7 + $0x1c8] sm:$0xff] %v1423_v5  ;;  %v1324_v59 = vmul.f32 %v4159_v33, %v1132_v61  ;;  %v898_v52 = vsub.f32 %v3221_v28, %v4162_v54  ;;  %1524 = vst [vmem:[#allocation7 + $0x1f0] sm:$0xff] %v1428_v56  ;;  %v1130_v34 = vmul.f32 %v1648_v35, %v3995_v36  ;;  %v4163_v28 = vld [vmem:[#allocation70_spill] sm:$0xff]  ;;  %v805_v58 = vmul.f32 0.00390625, %v3227_v51 }
 0x193   :  { %v1325_v1 = vmul.f32 %v4161_v55, %v1133_v11  ;;  %1525 = vst [vmem:[#allocation7 + $0x1f8] sm:$0xff] %v1429_v44  ;;  %v1426_v53 = vadd.f32 %v2373_v21, %v1318_v6  ;;  %v1427_v15 = vadd.f32 %v2384_v16, %v1319_v43  ;;  %v1131_v32 = vmul.f32 %v1648_v35, %v2371_v30  ;;  %v4168_v44 = vld [vmem:[#allocation72_spill] sm:$0xff]  ;;  %v4171_v6 = vld [vmem:[#allocation73_spill] sm:$0xff] }
 0x194   :  { %v1432_v26 = vadd.f32 %v2373_v21, %v1324_v59  ;;  %1653 = vrsqrt.f32 %v995_v0  ;;  %v946_v9 = vmax.f32 %v898_v52, 0.0  ;;  %v4165_v63 = vsub.f32 %v4163_v28, %v4164_v48  ;;  %v711_v59 = vpop.xlane.xlu1 %710  ;;  %v4176_v52 = vld [vmem:[#allocation75_spill] sm:$0xff] }
 0x195   :  { %v1433_v14 = vadd.f32 %v2384_v16, %v1325_v1  ;;  %1522 = vst [vmem:[#allocation7 + $0x1e0] sm:$0xff] %v1426_v53  ;;  %1523 = vst [vmem:[#allocation7 + $0x1e8] sm:$0xff] %v1427_v15  ;;  %v4167_v29 = vsub.f32 %v4166_v42, %v4164_v48  ;;  %v1136_v27 = vmul.f32 %v1650_v10, %v3995_v36  ;;  %v804_v5 = vmul.f32 0.00390625, %v3239_v7  ;;  %v1652_v43 = vpop.eup %1651 }
 0x196   :  { %v1322_v18 = vmul.f32 %v4165_v63, %v1130_v34  ;;  %v1137_v8 = vmul.f32 %v1650_v10, %v2371_v30  ;;  %1528 = vst [vmem:[#allocation7 + $0x210] sm:$0xff] %v1432_v26  ;;  %v994_v20 = vadd.f32 1e-12, %v946_v9  ;;  %v807_v61 = vmul.f32 0.00390625, %v699_v39  ;;  %v708_v10 = vpop.xlane.xlu0 %707 }
 0x197   :  { %v1323_v25 = vmul.f32 %v4167_v29, %v1131_v32  ;;  %1529 = vst [vmem:[#allocation7 + $0x218] sm:$0xff] %v1433_v14  ;;  %v4170_v24 = vsub.f32 %v4168_v44, %v4169_v17  ;;  %v4172_v38 = vsub.f32 %v4171_v6, %v4169_v17  ;;  %v901_v35 = vsub.f32 %v805_v58, %v2837_v19  ;;  %v4173_v19 = vld [vmem:[#allocation74_spill] sm:$0xff] }
 0x198   :  { %v1430_v11 = vadd.f32 %v2373_v21, %v1322_v18  ;;  %1655 = vrsqrt.f32 %v994_v20  ;;  %v900_v51 = vsub.f32 %v804_v5, %v2847_v49  ;;  %v903_v7 = vsub.f32 %v807_v61, %v2860_v22  ;;  %v4174_v49 = vld [vmem:[#allocation139_spill] sm:$0xff]  ;;  %v4179_v5 = vld [vmem:[#allocation141_spill] sm:$0xff] }
 0x199   :  { %v1431_v56 = vadd.f32 %v2384_v16, %v1323_v25  ;;  %v1328_v57 = vmul.f32 %v4170_v24, %v1136_v27  ;;  %v1329_v41 = vmul.f32 %v4172_v38, %v1137_v8  ;;  %v1134_v31 = vmul.f32 %v1652_v43, %v3995_v36 }
 0x19a   :  { %1526 = vst [vmem:[#allocation7 + $0x200] sm:$0xff] %v1430_v11  ;;  %v1135_v33 = vmul.f32 %v1652_v43, %v2371_v30  ;;  %v949_v12 = vmax.f32 %v901_v35, 0.0  ;;  %v948_v55 = vmax.f32 %v900_v51, 0.0  ;;  %v951_v1 = vmax.f32 %v903_v7, 0.0  ;;  %v714_v35 = vpop.xlane.xlu0 %713 }
 0x19b   :  { %1527 = vst [vmem:[#allocation7 + $0x208] sm:$0xff] %v1431_v56  ;;  %v1436_v39 = vadd.f32 %v2373_v21, %v1328_v57  ;;  %v1437_v47 = vadd.f32 %v2384_v16, %v1329_v41  ;;  %v806_v0 = vmul.f32 0.00390625, %v696_v40  ;;  %v4175_v22 = vsub.f32 %v4173_v19, %v4174_v49  ;;  %v4181_v56 = vld [vmem:[#allocation77_spill] sm:$0xff] }
 0x19c   :  { %v4177_v53 = vsub.f32 %v4176_v52, %v4174_v49  ;;  %v809_v34 = vmul.f32 0.00390625, %v705_v4  ;;  %v808_v32 = vmul.f32 0.00390625, %v702_v46  ;;  %v997_v26 = vadd.f32 1e-12, %v949_v12  ;;  %v717_v46 = vpop.xlane.xlu1 %716 }
 0x19d   :  { %1532 = vst [vmem:[#allocation7 + $0x230] sm:$0xff] %v1436_v39  ;;  %1533 = vst [vmem:[#allocation7 + $0x238] sm:$0xff] %v1437_v47  ;;  %v1326_v54 = vmul.f32 %v4175_v22, %v1134_v31  ;;  %v996_v14 = vadd.f32 1e-12, %v948_v55  ;;  %v999_v9 = vadd.f32 1e-12, %v951_v1  ;;  %v902_v28 = vsub.f32 %v806_v0, %v2866_v62 }
 0x19e   :  { %v1327_v15 = vmul.f32 %v4177_v53, %v1135_v33  ;;  %v905_v63 = vsub.f32 %v809_v34, %v2879_v3  ;;  %v904_v18 = vsub.f32 %v808_v32, %v2899_v23  ;;  %v1654_v42 = vpop.eup %1653  ;;  %1657 = vrsqrt.f32 %v997_v26  ;;  %v4178_v23 = vld [vmem:[#allocation76_spill] sm:$0xff]  ;;  %v4186_v1 = vld [vmem:[#allocation79_spill] sm:$0xff] }
 0x19f   :  { %v1434_v40 = vadd.f32 %v2373_v21, %v1326_v54  ;;  %v950_v29 = vmax.f32 %v902_v28, 0.0  ;;  %v811_v25 = vmul.f32 0.00390625, %v711_v59  ;;  %v810_v4 = vmul.f32 0.00390625, %v708_v10  ;;  %v4184_v59 = vld [vmem:[#allocation143_spill] sm:$0xff]  ;;  %v4191_v28 = vld [vmem:[#allocation153_spill] sm:$0xff] }
 0x1a0   :  { %v1435_v48 = vadd.f32 %v2384_v16, %v1327_v15  ;;  %v1140_v27 = vmul.f32 %v1654_v42, %v3995_v36  ;;  %v1141_v8 = vmul.f32 %v1654_v42, %v2371_v30  ;;  %1659 = vrsqrt.f32 %v996_v14  ;;  %v4188_v22 = vld [vmem:[#allocation91_spill] sm:$0xff]  ;;  %v4190_v14 = vld [vmem:[#allocation93_spill] sm:$0xff] }
 0x1a1   :  { %1530 = vst [vmem:[#allocation7 + $0x220] sm:$0xff] %v1434_v40  ;;  %v953_v62 = vmax.f32 %v905_v63, 0.0  ;;  %1661 = vrsqrt.f32 %v999_v9  ;;  %v998_v20 = vadd.f32 1e-12, %v950_v29  ;;  %v952_v58 = vmax.f32 %v904_v18, 0.0  ;;  %v4192_v40 = vld [vmem:[#allocation94_spill] sm:$0xff] }
 0x1a2   :  { %1531 = vst [vmem:[#allocation7 + $0x228] sm:$0xff] %v1435_v48  ;;  %v907_v3 = vsub.f32 %v811_v25, %v2903_v13  ;;  %v4180_v61 = vsub.f32 %v4178_v23, %v4179_v5  ;;  %v4182_v44 = vsub.f32 %v4181_v56, %v4179_v5  ;;  %v906_v57 = vsub.f32 %v810_v4, %v2907_v50  ;;  %v1656_v6 = vpop.eup %1655  ;;  %v4183_v50 = vld [vmem:[#allocation78_spill] sm:$0xff]  ;;  %v4193_v42 = vld [vmem:[#allocation95_spill] sm:$0xff]  ;;  %v4197_v23 = vld [vmem:[#allocation144_spill] sm:$0xff] }
 0x1a3   :  { %v1001_v24 = vadd.f32 1e-12, %v953_v62  ;;  %1663 = vrsqrt.f32 %v998_v20  ;;  %v1000_v38 = vadd.f32 1e-12, %v952_v58  ;;  %v813_v43 = vmul.f32 0.00390625, %v717_v46  ;;  %v4195_v62 = vld [vmem:[#allocation96_spill] sm:$0xff] }
 0x1a4   :  { %v1332_v11 = vmul.f32 %v4180_v61, %v1140_v27  ;;  %v1333_v17 = vmul.f32 %v4182_v44, %v1141_v8  ;;  %v955_v41 = vmax.f32 %v907_v3, 0.0  ;;  %v1138_v7 = vmul.f32 %v1656_v6, %v3995_v36  ;;  %v4194_v8 = vld [vmem:[#allocation154_spill] sm:$0xff]  ;;  %v4196_v3 = vld [vmem:[#allocation80_spill] sm:$0xff] }
 0x1a5   :  { %v1139_v39 = vmul.f32 %v1656_v6, %v2371_v30  ;;  %1665 = vrsqrt.f32 %v1001_v24  ;;  %v954_v31 = vmax.f32 %v906_v57, 0.0  ;;  %v909_v33 = vsub.f32 %v813_v43, %v2912_v45  ;;  %v4189_v45 = vld [vmem:[#allocation92_spill] sm:$0xff]  ;;  %v4201_v6 = vld [vmem:[#allocation97_spill] sm:$0xff]  ;;  %v4203_v43 = vld [vmem:[#allocation147_spill] sm:$0xff] }
 0x1a6   :  { %v1440_v51 = vadd.f32 %v2373_v21, %v1332_v11  ;;  %v1441_v13 = vadd.f32 %v2384_v16, %v1333_v17  ;;  %v1003_v47 = vadd.f32 1e-12, %v955_v41  ;;  %v4185_v12 = vsub.f32 %v4183_v50, %v4184_v59  ;;  %v4199_v11 = vld [vmem:[#allocation81_spill] sm:$0xff]  ;;  %v4202_v41 = vld [vmem:[#allocation82_spill] sm:$0xff]  ;;  %v4207_v50 = vld [vmem:[#allocation84_spill] sm:$0xff] }
 0x1a7   :  { %v4187_v0 = vsub.f32 %v4186_v1, %v4184_v59  ;;  %1667 = vrsqrt.f32 %v1000_v38  ;;  %v812_v49 = vmul.f32 0.00390625, %v714_v35  ;;  %v1247_v54 = vsub.f32 %v4188_v22, %v2871_v60  ;;  %v4208_v59 = vld [vmem:[#allocation148_spill] sm:$0xff]  ;;  %v4210_v1 = vld [vmem:[#allocation85_spill] sm:$0xff] }
 0x1a8   :  { %1536 = vst [vmem:[#allocation7 + $0x250] sm:$0xff] %v1440_v51  ;;  %1537 = vst [vmem:[#allocation7 + $0x258] sm:$0xff] %v1441_v13  ;;  %v1330_v55 = vmul.f32 %v4185_v12, %v1138_v7  ;;  %1669 = vrsqrt.f32 %v1003_v47  ;;  %v1002_v52 = vadd.f32 1e-12, %v954_v31  ;;  %v957_v53 = vmax.f32 %v909_v33, 0.0  ;;  %v1658_v26 = vpop.eup %1657  ;;  %v4205_v13 = vld [vmem:[#allocation83_spill] sm:$0xff] }
 0x1a9   :  { %v1331_v19 = vmul.f32 %v4187_v0, %v1139_v39  ;;  %v1252_v15 = vsub.f32 %v4189_v45, %v2882_v2  ;;  %v908_v10 = vsub.f32 %v812_v49, %v2916_v37  ;;  %v1253_v9 = vsub.f32 %v4190_v14, %v2882_v2 }
 0x1aa   :  { %v1438_v34 = vadd.f32 %v2373_v21, %v1330_v55  ;;  %v1250_v48 = vsub.f32 %v4192_v40, %v4191_v28  ;;  %1671 = vrsqrt.f32 %v1002_v52  ;;  %v1005_v63 = vadd.f32 1e-12, %v957_v53  ;;  %v1660_v18 = vpop.eup %1659 }
 0x1ab   :  { %v1439_v32 = vadd.f32 %v2384_v16, %v1331_v19  ;;  %v1251_v29 = vsub.f32 %v4193_v42, %v4191_v28  ;;  %v1144_v25 = vmul.f32 %v1658_v26, %v3995_v36  ;;  %v1145_v4 = vmul.f32 %v1658_v26, %v2371_v30  ;;  %v1662_v27 = vpop.eup %1661 }
 0x1ac   :  { %1534 = vst [vmem:[#allocation7 + $0x240] sm:$0xff] %v1438_v34  ;;  %v956_v37 = vmax.f32 %v908_v10, 0.0  ;;  %v1256_v46 = vsub.f32 %v4195_v62, %v4194_v8  ;;  %v1142_v20 = vmul.f32 %v1660_v18, %v3995_v36  ;;  %v1143_v58 = vmul.f32 %v1660_v18, %v2371_v30  ;;  %v4225_v62 = vld [vmem:[#allocation98_spill] sm:$0xff] }
 0x1ad   :  { %1535 = vst [vmem:[#allocation7 + $0x248] sm:$0xff] %v1439_v32  ;;  %1673 = vrsqrt.f32 %v1005_v63  ;;  %v4198_v5 = vsub.f32 %v4196_v3, %v4197_v23  ;;  %v4200_v56 = vsub.f32 %v4199_v11, %v4197_v23  ;;  %v1148_v17 = vmul.f32 %v1662_v27, %v3995_v36  ;;  %v1664_v57 = vpop.eup %1663  ;;  %v4217_v11 = vld [vmem:[#allocation88_spill] sm:$0xff] }
 0x1ae   :  { %v1149_v24 = vmul.f32 %v1662_v27, %v2371_v30  ;;  %v1257_v38 = vsub.f32 %v4201_v6, %v4194_v8  ;;  %v4204_v35 = vsub.f32 %v4202_v41, %v4203_v43  ;;  %v4206_v7 = vsub.f32 %v4205_v13, %v4203_v43 }
 0x1af   :  { %v1336_v61 = vmul.f32 %v4198_v5, %v1144_v25  ;;  %v1337_v44 = vmul.f32 %v4200_v56, %v1145_v4  ;;  %v1004_v47 = vadd.f32 1e-12, %v956_v37  ;;  %v4209_v12 = vsub.f32 %v4207_v50, %v4208_v59  ;;  %v1666_v49 = vpop.eup %1665  ;;  %v4212_v4 = vld [vmem:[#allocation86_spill] sm:$0xff]  ;;  %v4213_v37 = vld [vmem:[#allocation151_spill] sm:$0xff]  ;;  %v4218_v56 = vld [vmem:[#allocation152_spill] sm:$0xff] }
 0x1b0   :  { %v1334_v51 = vmul.f32 %v4204_v35, %v1142_v20  ;;  %v1335_v39 = vmul.f32 %v4206_v7, %v1143_v58  ;;  %v4211_v0 = vsub.f32 %v4210_v1, %v4208_v59  ;;  %v1146_v34 = vmul.f32 %v1664_v57, %v3995_v36  ;;  %v4215_v58 = vld [vmem:[#allocation87_spill] sm:$0xff] }
 0x1b1   :  { %v1444_v31 = vadd.f32 %v2373_v21, %v1336_v61  ;;  %v1445_v33 = vadd.f32 %v2384_v16, %v1337_v44  ;;  %v1340_v55 = vmul.f32 %v4209_v12, %v1148_v17  ;;  %v1147_v32 = vmul.f32 %v1664_v57, %v2371_v30  ;;  %v1668_v10 = vpop.eup %1667 }
 0x1b2   :  { %v1341_v19 = vmul.f32 %v4211_v0, %v1149_v24  ;;  %v1442_v52 = vadd.f32 %v2373_v21, %v1334_v51  ;;  %v1443_v53 = vadd.f32 %v2384_v16, %v1335_v39  ;;  %v1152_v63 = vmul.f32 %v1666_v49, %v3995_v36  ;;  %v1670_v25 = vpop.eup %1669  ;;  %v4220_v24 = vld [vmem:[#allocation89_spill] sm:$0xff]  ;;  %v4222_v39 = vld [vmem:[#allocation90_spill] sm:$0xff] }
 0x1b3   :  { %1540 = vst [vmem:[#allocation7 + $0x270] sm:$0xff] %v1444_v31  ;;  %1541 = vst [vmem:[#allocation7 + $0x278] sm:$0xff] %v1445_v33  ;;  %v1448_v26 = vadd.f32 %v2373_v21, %v1340_v55  ;;  %v1153_v18 = vmul.f32 %v1666_v49, %v2371_v30  ;;  %v4214_v27 = vsub.f32 %v4212_v4, %v4213_v37  ;;  %1675 = vrsqrt.f32 %v1004_v47  ;;  %v4226_v47 = vld [vmem:[#allocation99_spill] sm:$0xff] }
 0x1b4   :  { %v1449_v14 = vadd.f32 %v2384_v16, %v1341_v19  ;;  %1538 = vst [vmem:[#allocation7 + $0x260] sm:$0xff] %v1442_v52  ;;  %1539 = vst [vmem:[#allocation7 + $0x268] sm:$0xff] %v1443_v53  ;;  %v4216_v3 = vsub.f32 %v4215_v58, %v4213_v37  ;;  %v1150_v5 = vmul.f32 %v1668_v10, %v3995_v36  ;;  %v1672_v51 = vpop.eup %1671 }
 0x1b5   :  { %v1338_v20 = vmul.f32 %v4214_v27, %v1146_v34  ;;  %v1151_v61 = vmul.f32 %v1668_v10, %v2371_v30  ;;  %1544 = vst [vmem:[#allocation7 + $0x290] sm:$0xff] %v1448_v26  ;;  %v4219_v44 = vsub.f32 %v4217_v11, %v4218_v56  ;;  %v4221_v57 = vsub.f32 %v4220_v24, %v4218_v56 }
 0x1b6   :  { %v1339_v23 = vmul.f32 %v4216_v3, %v1147_v32  ;;  %1545 = vst [vmem:[#allocation7 + $0x298] sm:$0xff] %v1449_v14  ;;  %v1156_v43 = vmul.f32 %v1670_v25, %v3995_v36  ;;  %v1157_v35 = vmul.f32 %v1670_v25, %v2371_v30  ;;  %v4223_v31 = vsub.f32 %v4222_v39, %v2871_v60 }
 0x1b7   :  { %v1344_v17 = vmul.f32 %v4219_v44, %v1152_v63  ;;  %v1345_v41 = vmul.f32 %v4221_v57, %v1153_v18  ;;  %v1446_v13 = vadd.f32 %v2373_v21, %v1338_v20  ;;  %v1343_v50 = vmul.f32 %v1247_v54, %v1151_v61  ;;  %v1674_v0 = vpop.eup %1673 }
 0x1b8   :  { %v1447_v7 = vadd.f32 %v2384_v16, %v1339_v23  ;;  %v1342_v33 = vmul.f32 %v4223_v31, %v1150_v5  ;;  %v1348_v55 = vmul.f32 %v1252_v15, %v1156_v43  ;;  %v1349_v1 = vmul.f32 %v1253_v9, %v1157_v35 }
 0x1b9   :  { %v1452_v59 = vadd.f32 %v2373_v21, %v1344_v17  ;;  %v1453_v12 = vadd.f32 %v2384_v16, %v1345_v41  ;;  %1542 = vst [vmem:[#allocation7 + $0x280] sm:$0xff] %v1446_v13  ;;  %v1451_v49 = vadd.f32 %v2384_v16, %v1343_v50  ;;  %v1154_v52 = vmul.f32 %v1672_v51, %v3995_v36 }
 0x1ba   :  { %1543 = vst [vmem:[#allocation7 + $0x288] sm:$0xff] %v1447_v7  ;;  %v1450_v19 = vadd.f32 %v2373_v21, %v1342_v33  ;;  %v1155_v60 = vmul.f32 %v1672_v51, %v2371_v30  ;;  %v1456_v22 = vadd.f32 %v2373_v21, %v1348_v55  ;;  %v1457_v54 = vadd.f32 %v2384_v16, %v1349_v1 }
 0x1bb   :  { %1548 = vst [vmem:[#allocation7 + $0x2b0] sm:$0xff] %v1452_v59  ;;  %1549 = vst [vmem:[#allocation7 + $0x2b8] sm:$0xff] %v1453_v12  ;;  %v1160_v2 = vmul.f32 %v1674_v0, %v3995_v36  ;;  %v1161_v45 = vmul.f32 %v1674_v0, %v2371_v30  ;;  %v1346_v15 = vmul.f32 %v1250_v48, %v1154_v52 }
 0x1bc   :  { %1546 = vst [vmem:[#allocation7 + $0x2a0] sm:$0xff] %v1450_v19  ;;  %1547 = vst [vmem:[#allocation7 + $0x2a8] sm:$0xff] %v1451_v49  ;;  %v1347_v9 = vmul.f32 %v1251_v29, %v1155_v60  ;;  %v4224_v29 = vld [vmem:[#allocation155_spill] sm:$0xff] }
 0x1bd   :  { %1552 = vst [vmem:[#allocation7 + $0x2d0] sm:$0xff] %v1456_v22  ;;  %1553 = vst [vmem:[#allocation7 + $0x2d8] sm:$0xff] %v1457_v54  ;;  %v1352_v53 = vmul.f32 %v1256_v46, %v1160_v2  ;;  %v1353_v34 = vmul.f32 %v1257_v38, %v1161_v45  ;;  %v1454_v32 = vadd.f32 %v2373_v21, %v1346_v15  ;;  %v1676_v42 = vpop.eup %1675 }
 0x1be   :  { %v1455_v40 = vadd.f32 %v2384_v16, %v1347_v9  ;;  %v1254_v46 = vsub.f32 %v4225_v62, %v4224_v29  ;;  %v1255_v8 = vsub.f32 %v4226_v47, %v4224_v29  ;;  %v1158_v6 = vmul.f32 %v1676_v42, %v3995_v36 }
 0x1bf   :  { %v1460_v48 = vadd.f32 %v2373_v21, %v1352_v53  ;;  %v1461_v28 = vadd.f32 %v2384_v16, %v1353_v34  ;;  %1550 = vst [vmem:[#allocation7 + $0x2c0] sm:$0xff] %v1454_v32  ;;  %v1159_v38 = vmul.f32 %v1676_v42, %v2371_v30 }
 0x1c0   :  { %1551 = vst [vmem:[#allocation7 + $0x2c8] sm:$0xff] %v1455_v40  ;;  %v1350_v10 = vmul.f32 %v1254_v46, %v1158_v6 }
 0x1c1   :  { %1556 = vst [vmem:[#allocation7 + $0x2f0] sm:$0xff] %v1460_v48  ;;  %1557 = vst [vmem:[#allocation7 + $0x2f8] sm:$0xff] %v1461_v28  ;;  %v1351_v26 = vmul.f32 %v1255_v8, %v1159_v38 }
 0x1c2   :  { %v1458_v14 = vadd.f32 %v2373_v21, %v1350_v10 }
 0x1c3   :  { %v1459_v63 = vadd.f32 %v2384_v16, %v1351_v26 }
 0x1c4   :  { %1554 = vst [vmem:[#allocation7 + $0x2e0] sm:$0xff] %v1458_v14 }
 0x1c5   :  { %1555 = vst [vmem:[#allocation7 + $0x2e8] sm:$0xff] %v1459_v63 }
 0x1c6   :  { %1732 = shalt.err (!%p1729_p6)
}
 0x1c7   :  { %s1733_s20 = scalar_lea.hbm %s3492_s4, 12288 }
 0x1c8   :  { %p1734_p7 = scmp.ne.s32.totalorder %s3492_s4, %s1733_s20  ;;  %p1737_p8 = scmp.lt.u32.totalorder %s1733_s20, %s3492_s4 }
 0x1ca   :  { %p1739_p9 = pnand %p1737_p8, %p1734_p7 }
 0x1cc   :  { %1742 = shalt.err (!%p1739_p9)
}
 0x1cd   :  { %1569 = dma.vmem_to_hbm [thread:$0]  %s1564_s3, 12288, %s3492_s4, [#allocation4], %s1750_s25, %s1750_s25, %s1751_s26  }
 0x1ce   :  { %1747 = dma.done.wait [#allocation4], 12288  }
 0x1cf   :  { %1748 = vsyncadd [#allocation4], 4294955008 }
 0x1d0   :  { %1573 = vsyncpa [#allocation3], 1 }
 0x1d1   :  { %1574 = vsyncpa [#allocation6], 1 }
 0x1d2   :  { %1575 = vsyncpa [#allocation4], 1 }

</bundles_post_ra>
